<compile_context>
chip_gen: v7x
topology: tpu7x:2x2x1
jax: 0.10.0
libtpu: 0.0.40
codegen_flags: <defaults>
</compile_context>

<pallas_src>
import functools

import jax
import jax.numpy as jnp
import numpy as np
from jax.experimental import pallas as pl
from jax.experimental.pallas import tpu as pltpu

_LN_EPS = 1e-5  # PyTorch nn.LayerNorm default


# ----------------------------------------------------------------------------- helpers
def _compiler_params(per_step_bytes):
    """Batch-parallel grid + a scoped-VMEM request derived from the real tile footprint."""
    limit = int(min(max(2 * per_step_bytes + (8 << 20), 16 << 20), 40 << 20))
    return pltpu.CompilerParams(
        dimension_semantics=("parallel",),   # megacore sharding of the batch axis on v7x
        vmem_limit_bytes=limit,
    )


def _layernorm_2d(x, w, b, eps):
    """LayerNorm over ALL elements of a 2-D (C, S) tile == PyTorch LayerNorm([C, P, P])."""
    n = x.shape[0] * x.shape[1]
    row_sum = jnp.sum(x, axis=-1, keepdims=True)             # (C, 1)  lane reduce
    mean = jnp.sum(row_sum, axis=0, keepdims=True) / n        # (1, 1)  sublane reduce
    xc = x - mean
    sq_row = jnp.sum(xc * xc, axis=-1, keepdims=True)
    var = jnp.sum(sq_row, axis=0, keepdims=True) / n          # biased variance (PyTorch)
    inv = jax.lax.rsqrt(var + eps)
    return xc * inv * w + b


# ----------------------------------------------------------------------------- kernels
def _ln_qkv_kernel(x_ref, lnw_ref, lnb_ref,
                   wq_ref, bq_ref, wk_ref, bk_ref, wv_ref, bv_ref,
                   q_ref, k_ref, v_ref, *, eps):
    """Fused PreNorm LayerNorm + Q/K/V 1x1-conv projections for one batch element."""
    x = x_ref[0].astype(jnp.float32)                                        # (C, S)
    y = _layernorm_2d(x, lnw_ref[...].astype(jnp.float32),
                      lnb_ref[...].astype(jnp.float32), eps)

    def proj(w_ref, b_ref):
        return (jnp.dot(w_ref[...].astype(jnp.float32), y,
                        preferred_element_type=jnp.float32)
                + b_ref[...].astype(jnp.float32))                           # (C,S)+(C,1)

    q_ref[0] = proj(wq_ref, bq_ref).astype(q_ref.dtype)
    k_ref[0] = proj(wk_ref, bk_ref).astype(k_ref.dtype)
    v_ref[0] = proj(wv_ref, bv_ref).astype(v_ref.dtype)


def _attention_kernel(q_ref, k_ref, v_ref, o_ref, *, scale):
    """softmax(q k^T * scale) v, per head, for one batch element."""
    q = q_ref[0].astype(jnp.float32)                                        # (H, C, L)
    k = k_ref[0].astype(jnp.float32)
    v = v_ref[0].astype(jnp.float32)
    dots = jnp.einsum("hcl,hdl->hcd", q, k,
                      preferred_element_type=jnp.float32) * scale           # (H, C, C)
    dots = dots - jnp.max(dots, axis=-1, keepdims=True)
    e = jnp.exp(dots)
    attn = e / jnp.sum(e, axis=-1, keepdims=True)
    out = jnp.einsum("hcd,hdl->hcl", attn, v,
                     preferred_element_type=jnp.float32)                    # (H, C, L)
    o_ref[0] = out.astype(o_ref.dtype)


def _proj_residual_kernel(a_ref, wo_ref, xres_ref, o_ref):
    """to_out 1x1 conv (no bias) fused with the residual add."""
    a = a_ref[0].astype(jnp.float32)                                        # (C, S)
    o = jnp.dot(wo_ref[...].astype(jnp.float32), a,
                preferred_element_type=jnp.float32)
    o_ref[0] = (o + xres_ref[0].astype(jnp.float32)).astype(o_ref.dtype)


def _ln_ffn_residual_kernel(x_ref, lnw_ref, lnb_ref, w1_ref, w2_ref, o_ref, *, eps):
    """Fused PreNorm LayerNorm + FeedForward (conv -> GELU -> conv) + residual add."""
    x = x_ref[0].astype(jnp.float32)                                        # (C, S)
    y = _layernorm_2d(x, lnw_ref[...].astype(jnp.float32),
                      lnb_ref[...].astype(jnp.float32), eps)
    h = jnp.dot(w1_ref[...].astype(jnp.float32), y,
                preferred_element_type=jnp.float32)                         # (hidden, S)
    # TODO(synk): PyTorch nn.GELU() is the exact erf GELU; the tanh approximation is
    # used here (EUP-friendly, max abs deviation ~3e-3).
    h = jax.nn.gelu(h, approximate=True)
    f = jnp.dot(w2_ref[...].astype(jnp.float32), h,
                preferred_element_type=jnp.float32)                         # (C, S)
    o_ref[0] = (f + x).astype(o_ref.dtype)


# ----------------------------------------------------------------------------- wrappers
def prenorm_qkv(x, ln_w, ln_b, wq, bq, wk, bk, wv, bv):
    B, C, S = x.shape
    itemsize = x.dtype.itemsize
    per_step = itemsize * (4 * C * S + 2 * C * S + 3 * (C * C + C))
    x_spec = pl.BlockSpec((1, C, S), lambda i: (i, 0, 0))
    cst = lambda shape: pl.BlockSpec(shape, lambda i: (0, 0))   # resident weights
    out_shape = tuple(jax.ShapeDtypeStruct((B, C, S), x.dtype) for _ in range(3))
    return pl.pallas_call(
        functools.partial(_ln_qkv_kernel, eps=_LN_EPS),
        out_shape=out_shape,
        grid=(B,),
        in_specs=[x_spec,
                  cst((C, S)), cst((C, S)),
                  cst((C, C)), cst((C, 1)),
                  cst((C, C)), cst((C, 1)),
                  cst((C, C)), cst((C, 1))],
        out_specs=(x_spec, x_spec, x_spec),
        compiler_params=_compiler_params(per_step),
    )(x, ln_w, ln_b, wq, bq, wk, bk, wv, bv)


def attention_core(q, k, v, *, scale):
    B, H, C, L = q.shape
    per_step = q.dtype.itemsize * 4 * H * C * L
    spec = pl.BlockSpec((1, H, C, L), lambda i: (i, 0, 0, 0))
    return pl.pallas_call(
        functools.partial(_attention_kernel, scale=scale),
        out_shape=jax.ShapeDtypeStruct((B, H, C, L), q.dtype),
        grid=(B,),
        in_specs=[spec, spec, spec],
        out_specs=spec,
        compiler_params=_compiler_params(per_step),
    )(q, k, v)


def out_proj_residual(a, wo, x):
    B, C, S = a.shape
    per_step = a.dtype.itemsize * (3 * C * S + C * C)
    t_spec = pl.BlockSpec((1, C, S), lambda i: (i, 0, 0))
    return pl.pallas_call(
        _proj_residual_kernel,
        out_shape=jax.ShapeDtypeStruct((B, C, S), a.dtype),
        grid=(B,),
        in_specs=[t_spec, pl.BlockSpec((C, C), lambda i: (0, 0)), t_spec],
        out_specs=t_spec,
        compiler_params=_compiler_params(per_step),
    )(a, wo, x)


def prenorm_ffn_residual(x, ln_w, ln_b, w1, w2):
    B, C, S = x.shape
    Hd = w1.shape[0]
    per_step = x.dtype.itemsize * (4 * C * S + 2 * Hd * C)
    t_spec = pl.BlockSpec((1, C, S), lambda i: (i, 0, 0))
    cst = lambda shape: pl.BlockSpec(shape, lambda i: (0, 0))
    return pl.pallas_call(
        functools.partial(_ln_ffn_residual_kernel, eps=_LN_EPS),
        out_shape=jax.ShapeDtypeStruct((B, C, S), x.dtype),
        grid=(B,),
        in_specs=[t_spec, cst((C, S)), cst((C, S)), cst((Hd, C)), cst((C, Hd))],
        out_specs=t_spec,
        compiler_params=_compiler_params(per_step),
    )(x, ln_w, ln_b, w1, w2)


def transformer_forward(x, params, *, heads, dim_head):
    B, C, P, P2 = x.shape
    assert P == P2
    S = P * P
    assert S % heads == 0
    L = S // heads
    # The PyTorch module's residual add only type-checks when heads == numb_patch.
    assert heads == P, "x = attn(x) + x requires heads == numb_patch"
    scale = float(dim_head) ** -0.5

    x2 = x.reshape(B, C, S)
    for layer in params:
        # ---- PreNorm + Attention + residual ----
        q, k, v = prenorm_qkv(
            x2, layer["ln1_w"].reshape(C, S), layer["ln1_b"].reshape(C, S),
            layer["wq"], layer["bq"].reshape(C, 1),
            layer["wk"], layer["bk"].reshape(C, 1),
            layer["wv"], layer["bv"].reshape(C, 1))
        # torch's .view(b, heads, dim, -1) on a contiguous NCHW tensor == flat reshape
        q4 = q.reshape(B, heads, C, L)
        k4 = k.reshape(B, heads, C, L)
        v4 = v.reshape(B, heads, C, L)
        a = attention_core(q4, k4, v4, scale=scale)                 # (B, H, C, L)
        # torch: out.permute(0, 2, 1, 3) -> (B, C, H, L); flatten spatial for the 1x1 conv
        a2 = jnp.transpose(a, (0, 2, 1, 3)).reshape(B, C, S)
        x2 = out_proj_residual(a2, layer["wo"], x2)
        # ---- PreNorm + FeedForward + residual ----
        x2 = prenorm_ffn_residual(
            x2, layer["ln2_w"].reshape(C, S), layer["ln2_b"].reshape(C, S),
            layer["w1"], layer["w2"])
    return x2.reshape(B, C, P, P)


# ----------------------------------------------------------------------------- reference
def _transformer_ref(x, params, *, heads, dim_head):
    prec = jax.lax.Precision.HIGHEST
    scale = float(dim_head) ** -0.5
    B, C, P, _ = x.shape

    def conv1x1(z, w, b=None):
        o = jnp.einsum("oc,bchw->bohw", w, z, precision=prec)
        return o if b is None else o + b[None, :, None, None]

    def layernorm(z, w, b):
        m = jnp.mean(z, axis=(1, 2, 3), keepdims=True)
        v = jnp.mean((z - m) ** 2, axis=(1, 2, 3), keepdims=True)
        return (z - m) * jax.lax.rsqrt(v + _LN_EPS) * w + b

    x = x.astype(jnp.float32)
    for layer in params:
        y = layernorm(x, layer["ln1_w"], layer["ln1_b"])
        q = conv1x1(y, layer["wq"], layer["bq"]).reshape(B, heads, C, -1)
        k = conv1x1(y, layer["wk"], layer["bk"]).reshape(B, heads, C, -1)
        v = conv1x1(y, layer["wv"], layer["bv"]).reshape(B, heads, C, -1)
        dots = jnp.einsum("bhcl,bhdl->bhcd", q, k, precision=prec) * scale
        attn = jax.nn.softmax(dots, axis=-1)
        out = jnp.einsum("bhcd,bhdl->bhcl", attn, v, precision=prec)
        out = jnp.transpose(out, (0, 2, 1, 3))                      # (B, C, H, L)
        x = conv1x1(out, layer["wo"]) + x
        y = layernorm(x, layer["ln2_w"], layer["ln2_b"])
        h = jax.nn.gelu(conv1x1(y, layer["w1"]), approximate=True)
        x = conv1x1(h, layer["w2"]) + x
    return x


# ----------------------------------------------------------------------------- params
def init_params(key, *, dim, depth, mlp_dim, numb_patch, dtype=jnp.float32):
    params = []
    for _ in range(depth):
        key, *ks = jax.random.split(key, 14)
        p = {
            "ln1_w": (1.0 + 0.1 * jax.random.normal(ks[0], (dim, numb_patch, numb_patch))).astype(dtype),
            "ln1_b": (0.1 * jax.random.normal(ks[1], (dim, numb_patch, numb_patch))).astype(dtype),
            "wq": (jax.random.normal(ks[2], (dim, dim)) / np.sqrt(dim)).astype(dtype),
            "bq": (0.1 * jax.random.normal(ks[3], (dim,))).astype(dtype),
            "wk": (jax.random.normal(ks[4], (dim, dim)) / np.sqrt(dim)).astype(dtype),
            "bk": (0.1 * jax.random.normal(ks[5], (dim,))).astype(dtype),
            "wv": (jax.random.normal(ks[6], (dim, dim)) / np.sqrt(dim)).astype(dtype),
            "bv": (0.1 * jax.random.normal(ks[7], (dim,))).astype(dtype),
            "wo": (jax.random.normal(ks[8], (dim, dim)) / np.sqrt(dim)).astype(dtype),
            "ln2_w": (1.0 + 0.1 * jax.random.normal(ks[9], (dim, numb_patch, numb_patch))).astype(dtype),
            "ln2_b": (0.1 * jax.random.normal(ks[10], (dim, numb_patch, numb_patch))).astype(dtype),
            "w1": (jax.random.normal(ks[11], (mlp_dim, dim)) / np.sqrt(dim)).astype(dtype),
            "w2": (jax.random.normal(ks[12], (dim, mlp_dim)) / np.sqrt(mlp_dim)).astype(dtype),
        }
        params.append(p)
    return params


if __name__ == "__main__":
    B, dim, numb_patch = 2, 4, 8
    heads = numb_patch          # required by the module's residual shapes
    dim_head = 16               # only enters via the softmax scale
    mlp_dim = 32
    depth = 2

    key = jax.random.PRNGKey(0)
    key, kx, kp = jax.random.split(key, 3)
    x = jax.random.normal(kx, (B, dim, numb_patch, numb_patch), dtype=jnp.float32)
    params = init_params(kp, dim=dim, depth=depth, mlp_dim=mlp_dim,
                         numb_patch=numb_patch, dtype=jnp.float32)

    fwd = jax.jit(functools.partial(transformer_forward, heads=heads, dim_head=dim_head))
    out = jax.block_until_ready(fwd(x, params))

    ref = _transformer_ref(x, params, heads=heads, dim_head=dim_head)
    np.testing.assert_allclose(np.asarray(out), np.asarray(ref), rtol=2e-3, atol=2e-3)

    print("KERNEL_OK")
</pallas_src>

<mosaic_0001>
module attributes {stable_mosaic.version = 11 : i64} {
  func.func @_ln_qkv_kernel(%arg0: i32, %arg1: memref<1x4x64xf32, #tpu.memory_space<vmem>>, %arg2: memref<4x64xf32, #tpu.memory_space<vmem>>, %arg3: memref<4x64xf32, #tpu.memory_space<vmem>>, %arg4: memref<4x4xf32, #tpu.memory_space<vmem>>, %arg5: memref<4x1xf32, #tpu.memory_space<vmem>>, %arg6: memref<4x4xf32, #tpu.memory_space<vmem>>, %arg7: memref<4x1xf32, #tpu.memory_space<vmem>>, %arg8: memref<4x4xf32, #tpu.memory_space<vmem>>, %arg9: memref<4x1xf32, #tpu.memory_space<vmem>>, %arg10: memref<1x4x64xf32, #tpu.memory_space<vmem>>, %arg11: memref<1x4x64xf32, #tpu.memory_space<vmem>>, %arg12: memref<1x4x64xf32, #tpu.memory_space<vmem>>) attributes {dimension_semantics = [#tpu.dimension_semantics<parallel>], iteration_bounds = array<i64: 2>, scalar_prefetch = 0 : i64, scratch_operands = 0 : i64, tpu.core_type = #tpu.core_type<tc>, window_params = [{transform_indices = @transform_0, window_bounds = array<i64: 1, 4, 64>}, {pipeline_mode = #tpu.pipeline_mode<synchronous>, transform_indices = @transform_1, window_bounds = array<i64: 4, 64>}, {pipeline_mode = #tpu.pipeline_mode<synchronous>, transform_indices = @transform_2, window_bounds = array<i64: 4, 64>}, {pipeline_mode = #tpu.pipeline_mode<synchronous>, transform_indices = @transform_3, window_bounds = array<i64: 4, 4>}, {pipeline_mode = #tpu.pipeline_mode<synchronous>, transform_indices = @transform_4, window_bounds = array<i64: 4, 1>}, {pipeline_mode = #tpu.pipeline_mode<synchronous>, transform_indices = @transform_5, window_bounds = array<i64: 4, 4>}, {pipeline_mode = #tpu.pipeline_mode<synchronous>, transform_indices = @transform_6, window_bounds = array<i64: 4, 1>}, {pipeline_mode = #tpu.pipeline_mode<synchronous>, transform_indices = @transform_7, window_bounds = array<i64: 4, 4>}, {pipeline_mode = #tpu.pipeline_mode<synchronous>, transform_indices = @transform_8, window_bounds = array<i64: 4, 1>}, {transform_indices = @transform_9, window_bounds = array<i64: 1, 4, 64>}, {transform_indices = @transform_10, window_bounds = array<i64: 1, 4, 64>}, {transform_indices = @transform_11, window_bounds = array<i64: 1, 4, 64>}]} {
    %c0 = arith.constant 0 : index
    %c0_0 = arith.constant 0 : index
    %c0_1 = arith.constant 0 : index
    %0 = vector.load %arg1[%c0, %c0_0, %c0_1] : memref<1x4x64xf32, #tpu.memory_space<vmem>>, vector<1x4x64xf32>
    %1 = vector.shape_cast %0 : vector<1x4x64xf32> to vector<4x64xf32>
    %c0_2 = arith.constant 0 : index
    %c0_3 = arith.constant 0 : index
    %2 = vector.load %arg2[%c0_2, %c0_3] : memref<4x64xf32, #tpu.memory_space<vmem>>, vector<4x64xf32>
    %c0_4 = arith.constant 0 : index
    %c0_5 = arith.constant 0 : index
    %3 = vector.load %arg3[%c0_4, %c0_5] : memref<4x64xf32, #tpu.memory_space<vmem>>, vector<4x64xf32>
    %cst = arith.constant dense<0.000000e+00> : vector<4xf32>
    %4 = vector.multi_reduction <add>, %1, %cst [1] : vector<4x64xf32> to vector<4xf32>
    %5 = vector.shape_cast %4 : vector<4xf32> to vector<4x1xf32>
    %cst_6 = arith.constant dense<0.000000e+00> : vector<1xf32>
    %6 = vector.multi_reduction <add>, %5, %cst_6 [0] : vector<4x1xf32> to vector<1xf32>
    %7 = vector.shape_cast %6 : vector<1xf32> to vector<1x1xf32>
    %cst_7 = arith.constant 2.560000e+02 : f32
    %8 = vector.broadcast %cst_7 : f32 to vector<1x1xf32>
    %9 = arith.divf %7, %8 : vector<1x1xf32>
    %10 = vector.broadcast %9 : vector<1x1xf32> to vector<4x64xf32>
    %11 = arith.subf %1, %10 : vector<4x64xf32>
    %12 = arith.mulf %11, %11 : vector<4x64xf32>
    %cst_8 = arith.constant dense<0.000000e+00> : vector<4xf32>
    %13 = vector.multi_reduction <add>, %12, %cst_8 [1] : vector<4x64xf32> to vector<4xf32>
    %14 = vector.shape_cast %13 : vector<4xf32> to vector<4x1xf32>
    %cst_9 = arith.constant dense<0.000000e+00> : vector<1xf32>
    %15 = vector.multi_reduction <add>, %14, %cst_9 [0] : vector<4x1xf32> to vector<1xf32>
    %16 = vector.shape_cast %15 : vector<1xf32> to vector<1x1xf32>
    %cst_10 = arith.constant 2.560000e+02 : f32
    %17 = vector.broadcast %cst_10 : f32 to vector<1x1xf32>
    %18 = arith.divf %16, %17 : vector<1x1xf32>
    %cst_11 = arith.constant 9.99999974E-6 : f32
    %19 = vector.broadcast %cst_11 : f32 to vector<1x1xf32>
    %20 = arith.addf %18, %19 : vector<1x1xf32>
    %21 = math.rsqrt %20 : vector<1x1xf32>
    %22 = vector.broadcast %21 : vector<1x1xf32> to vector<4x64xf32>
    %23 = arith.mulf %11, %22 : vector<4x64xf32>
    %24 = arith.mulf %23, %2 : vector<4x64xf32>
    %25 = arith.addf %24, %3 : vector<4x64xf32>
    %c0_12 = arith.constant 0 : index
    %c0_13 = arith.constant 0 : index
    %26 = vector.load %arg4[%c0_12, %c0_13] : memref<4x4xf32, #tpu.memory_space<vmem>>, vector<4x4xf32>
    %cst_14 = arith.constant dense<0.000000e+00> : vector<4x64xf32>
    %27 = tpu.matmul %26, %25, %cst_14 {dimension_numbers = #tpu.dot_dimension_numbers<[1], [0], [0], [1], [0, 0, 1, 1], [], []>} : vector<4x4xf32>, vector<4x64xf32>, vector<4x64xf32> -> vector<4x64xf32>
    %c0_15 = arith.constant 0 : index
    %c0_16 = arith.constant 0 : index
    %28 = vector.load %arg5[%c0_15, %c0_16] : memref<4x1xf32, #tpu.memory_space<vmem>>, vector<4x1xf32>
    %29 = vector.broadcast %28 : vector<4x1xf32> to vector<4x64xf32>
    %30 = arith.addf %27, %29 : vector<4x64xf32>
    %c0_17 = arith.constant 0 : index
    %c0_18 = arith.constant 0 : index
    %c0_19 = arith.constant 0 : index
    %31 = vector.load %arg10[%c0_17, %c0_18, %c0_19] : memref<1x4x64xf32, #tpu.memory_space<vmem>>, vector<1x4x64xf32>
    %32 = vector.shape_cast %31 : vector<1x4x64xf32> to vector<4x64xf32>
    %33 = vector.shape_cast %30 : vector<4x64xf32> to vector<1x4x64xf32>
    tpu.vector_store %arg10[%c0_17, %c0_18, %c0_19], %33 {strides = array<i32>} : memref<1x4x64xf32, #tpu.memory_space<vmem>>, vector<1x4x64xf32>,
    %c0_20 = arith.constant 0 : index
    %c0_21 = arith.constant 0 : index
    %34 = vector.load %arg6[%c0_20, %c0_21] : memref<4x4xf32, #tpu.memory_space<vmem>>, vector<4x4xf32>
    %cst_22 = arith.constant dense<0.000000e+00> : vector<4x64xf32>
    %35 = tpu.matmul %34, %25, %cst_22 {dimension_numbers = #tpu.dot_dimension_numbers<[1], [0], [0], [1], [0, 0, 1, 1], [], []>} : vector<4x4xf32>, vector<4x64xf32>, vector<4x64xf32> -> vector<4x64xf32>
    %c0_23 = arith.constant 0 : index
    %c0_24 = arith.constant 0 : index
    %36 = vector.load %arg7[%c0_23, %c0_24] : memref<4x1xf32, #tpu.memory_space<vmem>>, vector<4x1xf32>
    %37 = vector.broadcast %36 : vector<4x1xf32> to vector<4x64xf32>
    %38 = arith.addf %35, %37 : vector<4x64xf32>
    %c0_25 = arith.constant 0 : index
    %c0_26 = arith.constant 0 : index
    %c0_27 = arith.constant 0 : index
    %39 = vector.load %arg11[%c0_25, %c0_26, %c0_27] : memref<1x4x64xf32, #tpu.memory_space<vmem>>, vector<1x4x64xf32>
    %40 = vector.shape_cast %39 : vector<1x4x64xf32> to vector<4x64xf32>
    %41 = vector.shape_cast %38 : vector<4x64xf32> to vector<1x4x64xf32>
    tpu.vector_store %arg11[%c0_25, %c0_26, %c0_27], %41 {strides = array<i32>} : memref<1x4x64xf32, #tpu.memory_space<vmem>>, vector<1x4x64xf32>,
    %c0_28 = arith.constant 0 : index
    %c0_29 = arith.constant 0 : index
    %42 = vector.load %arg8[%c0_28, %c0_29] : memref<4x4xf32, #tpu.memory_space<vmem>>, vector<4x4xf32>
    %cst_30 = arith.constant dense<0.000000e+00> : vector<4x64xf32>
    %43 = tpu.matmul %42, %25, %cst_30 {dimension_numbers = #tpu.dot_dimension_numbers<[1], [0], [0], [1], [0, 0, 1, 1], [], []>} : vector<4x4xf32>, vector<4x64xf32>, vector<4x64xf32> -> vector<4x64xf32>
    %c0_31 = arith.constant 0 : index
    %c0_32 = arith.constant 0 : index
    %44 = vector.load %arg9[%c0_31, %c0_32] : memref<4x1xf32, #tpu.memory_space<vmem>>, vector<4x1xf32>
    %45 = vector.broadcast %44 : vector<4x1xf32> to vector<4x64xf32>
    %46 = arith.addf %43, %45 : vector<4x64xf32>
    %c0_33 = arith.constant 0 : index
    %c0_34 = arith.constant 0 : index
    %c0_35 = arith.constant 0 : index
    %47 = vector.load %arg12[%c0_33, %c0_34, %c0_35] : memref<1x4x64xf32, #tpu.memory_space<vmem>>, vector<1x4x64xf32>
    %48 = vector.shape_cast %47 : vector<1x4x64xf32> to vector<4x64xf32>
    %49 = vector.shape_cast %46 : vector<4x64xf32> to vector<1x4x64xf32>
    tpu.vector_store %arg12[%c0_33, %c0_34, %c0_35], %49 {strides = array<i32>} : memref<1x4x64xf32, #tpu.memory_space<vmem>>, vector<1x4x64xf32>,
    return
  }
  func.func @transform_0(%arg0: i32) -> (i32, i32, i32) {
    %c0_i32 = arith.constant 0 : i32
    %c0_i32_0 = arith.constant 0 : i32
    %c0_i32_1 = arith.constant 0 : i32
    return %arg0, %c0_i32, %c0_i32_0 : i32, i32, i32
  }
  func.func @transform_1(%arg0: i32) -> (i32, i32) {
    %c0_i32 = arith.constant 0 : i32
    %c0_i32_0 = arith.constant 0 : i32
    %c0_i32_1 = arith.constant 0 : i32
    return %c0_i32, %c0_i32_0 : i32, i32
  }
  func.func @transform_2(%arg0: i32) -> (i32, i32) {
    %c0_i32 = arith.constant 0 : i32
    %c0_i32_0 = arith.constant 0 : i32
    %c0_i32_1 = arith.constant 0 : i32
    return %c0_i32, %c0_i32_0 : i32, i32
  }
  func.func @transform_3(%arg0: i32) -> (i32, i32) {
    %c0_i32 = arith.constant 0 : i32
    %c0_i32_0 = arith.constant 0 : i32
    %c0_i32_1 = arith.constant 0 : i32
    return %c0_i32, %c0_i32_0 : i32, i32
  }
  func.func @transform_4(%arg0: i32) -> (i32, i32) {
    %c0_i32 = arith.constant 0 : i32
    %c0_i32_0 = arith.constant 0 : i32
    %c0_i32_1 = arith.constant 0 : i32
    return %c0_i32, %c0_i32_0 : i32, i32
  }
  func.func @transform_5(%arg0: i32) -> (i32, i32) {
    %c0_i32 = arith.constant 0 : i32
    %c0_i32_0 = arith.constant 0 : i32
    %c0_i32_1 = arith.constant 0 : i32
    return %c0_i32, %c0_i32_0 : i32, i32
  }
  func.func @transform_6(%arg0: i32) -> (i32, i32) {
    %c0_i32 = arith.constant 0 : i32
    %c0_i32_0 = arith.constant 0 : i32
    %c0_i32_1 = arith.constant 0 : i32
    return %c0_i32, %c0_i32_0 : i32, i32
  }
  func.func @transform_7(%arg0: i32) -> (i32, i32) {
    %c0_i32 = arith.constant 0 : i32
    %c0_i32_0 = arith.constant 0 : i32
    %c0_i32_1 = arith.constant 0 : i32
    return %c0_i32, %c0_i32_0 : i32, i32
  }
  func.func @transform_8(%arg0: i32) -> (i32, i32) {
    %c0_i32 = arith.constant 0 : i32
    %c0_i32_0 = arith.constant 0 : i32
    %c0_i32_1 = arith.constant 0 : i32
    return %c0_i32, %c0_i32_0 : i32, i32
  }
  func.func @transform_9(%arg0: i32) -> (i32, i32, i32) {
    %c0_i32 = arith.constant 0 : i32
    %c0_i32_0 = arith.constant 0 : i32
    %c0_i32_1 = arith.constant 0 : i32
    return %arg0, %c0_i32, %c0_i32_0 : i32, i32, i32
  }
  func.func @transform_10(%arg0: i32) -> (i32, i32, i32) {
    %c0_i32 = arith.constant 0 : i32
    %c0_i32_0 = arith.constant 0 : i32
    %c0_i32_1 = arith.constant 0 : i32
    return %arg0, %c0_i32, %c0_i32_0 : i32, i32, i32
  }
  func.func @transform_11(%arg0: i32) -> (i32, i32, i32) {
    %c0_i32 = arith.constant 0 : i32
    %c0_i32_0 = arith.constant 0 : i32
    %c0_i32_1 = arith.constant 0 : i32
    return %arg0, %c0_i32, %c0_i32_0 : i32, i32, i32
  }
}

module attributes {stable_mosaic.version = 11 : i64} {
  func.func @_attention_kernel(%arg0: i32, %arg1: memref<1x8x4x8xf32, #tpu.memory_space<vmem>>, %arg2: memref<1x8x4x8xf32, #tpu.memory_space<vmem>>, %arg3: memref<1x8x4x8xf32, #tpu.memory_space<vmem>>, %arg4: memref<1x8x4x8xf32, #tpu.memory_space<vmem>>) attributes {dimension_semantics = [#tpu.dimension_semantics<parallel>], iteration_bounds = array<i64: 2>, scalar_prefetch = 0 : i64, scratch_operands = 0 : i64, tpu.core_type = #tpu.core_type<tc>, window_params = [{transform_indices = @transform_0, window_bounds = array<i64: 1, 8, 4, 8>}, {transform_indices = @transform_1, window_bounds = array<i64: 1, 8, 4, 8>}, {transform_indices = @transform_2, window_bounds = array<i64: 1, 8, 4, 8>}, {transform_indices = @transform_3, window_bounds = array<i64: 1, 8, 4, 8>}]} {
    %c0 = arith.constant 0 : index
    %c0_0 = arith.constant 0 : index
    %c0_1 = arith.constant 0 : index
    %c0_2 = arith.constant 0 : index
    %0 = vector.load %arg1[%c0, %c0_0, %c0_1, %c0_2] : memref<1x8x4x8xf32, #tpu.memory_space<vmem>>, vector<1x8x4x8xf32>
    %1 = vector.shape_cast %0 : vector<1x8x4x8xf32> to vector<8x4x8xf32>
    %c0_3 = arith.constant 0 : index
    %c0_4 = arith.constant 0 : index
    %c0_5 = arith.constant 0 : index
    %c0_6 = arith.constant 0 : index
    %2 = vector.load %arg2[%c0_3, %c0_4, %c0_5, %c0_6] : memref<1x8x4x8xf32, #tpu.memory_space<vmem>>, vector<1x8x4x8xf32>
    %3 = vector.shape_cast %2 : vector<1x8x4x8xf32> to vector<8x4x8xf32>
    %c0_7 = arith.constant 0 : index
    %c0_8 = arith.constant 0 : index
    %c0_9 = arith.constant 0 : index
    %c0_10 = arith.constant 0 : index
    %4 = vector.load %arg3[%c0_7, %c0_8, %c0_9, %c0_10] : memref<1x8x4x8xf32, #tpu.memory_space<vmem>>, vector<1x8x4x8xf32>
    %5 = vector.shape_cast %4 : vector<1x8x4x8xf32> to vector<8x4x8xf32>
    "tpu.trace_start"() <{level = 10 : i32, message = "hcl,hdl->hcd"}> : () -> ()
    %cst = arith.constant dense<0.000000e+00> : vector<8x4x4xf32>
    %6 = tpu.matmul %1, %3, %cst {dimension_numbers = #tpu.dot_dimension_numbers<[2], [2], [1], [1], [0, 0, 0, 1, 1, 1], [0], [0]>} : vector<8x4x8xf32>, vector<8x4x8xf32>, vector<8x4x4xf32> -> vector<8x4x4xf32>
    "tpu.trace_stop"() : () -> ()
    %cst_11 = arith.constant 2.500000e-01 : f32
    %7 = vector.broadcast %cst_11 : f32 to vector<8x4x4xf32>
    %8 = arith.mulf %6, %7 : vector<8x4x4xf32>
    %cst_12 = arith.constant dense<0xFF800000> : vector<8x4xf32>
    %9 = vector.multi_reduction <maximumf>, %8, %cst_12 [2] : vector<8x4x4xf32> to vector<8x4xf32>
    %10 = vector.shape_cast %9 : vector<8x4xf32> to vector<8x4x1xf32>
    %11 = vector.broadcast %10 : vector<8x4x1xf32> to vector<8x4x4xf32>
    %12 = arith.subf %8, %11 : vector<8x4x4xf32>
    %13 = math.exp %12 : vector<8x4x4xf32>
    %cst_13 = arith.constant dense<0.000000e+00> : vector<8x4xf32>
    %14 = vector.multi_reduction <add>, %13, %cst_13 [2] : vector<8x4x4xf32> to vector<8x4xf32>
    %15 = vector.shape_cast %14 : vector<8x4xf32> to vector<8x4x1xf32>
    %16 = vector.broadcast %15 : vector<8x4x1xf32> to vector<8x4x4xf32>
    %17 = arith.divf %13, %16 : vector<8x4x4xf32>
    "tpu.trace_start"() <{level = 10 : i32, message = "hcd,hdl->hcl"}> : () -> ()
    %cst_14 = arith.constant dense<0.000000e+00> : vector<8x4x8xf32>
    %18 = tpu.matmul %17, %5, %cst_14 {dimension_numbers = #tpu.dot_dimension_numbers<[2], [1], [1], [2], [0, 0, 0, 1, 1, 2], [0], [0]>} : vector<8x4x4xf32>, vector<8x4x8xf32>, vector<8x4x8xf32> -> vector<8x4x8xf32>
    "tpu.trace_stop"() : () -> ()
    %c0_15 = arith.constant 0 : index
    %c0_16 = arith.constant 0 : index
    %c0_17 = arith.constant 0 : index
    %c0_18 = arith.constant 0 : index
    %19 = vector.load %arg4[%c0_15, %c0_16, %c0_17, %c0_18] : memref<1x8x4x8xf32, #tpu.memory_space<vmem>>, vector<1x8x4x8xf32>
    %20 = vector.shape_cast %19 : vector<1x8x4x8xf32> to vector<8x4x8xf32>
    %21 = vector.shape_cast %18 : vector<8x4x8xf32> to vector<1x8x4x8xf32>
    tpu.vector_store %arg4[%c0_15, %c0_16, %c0_17, %c0_18], %21 {strides = array<i32>} : memref<1x8x4x8xf32, #tpu.memory_space<vmem>>, vector<1x8x4x8xf32>,
    return
  }
  func.func @transform_0(%arg0: i32) -> (i32, i32, i32, i32) {
    %c0_i32 = arith.constant 0 : i32
    %c0_i32_0 = arith.constant 0 : i32
    %c0_i32_1 = arith.constant 0 : i32
    %c0_i32_2 = arith.constant 0 : i32
    return %arg0, %c0_i32, %c0_i32_0, %c0_i32_1 : i32, i32, i32, i32
  }
  func.func @transform_1(%arg0: i32) -> (i32, i32, i32, i32) {
    %c0_i32 = arith.constant 0 : i32
    %c0_i32_0 = arith.constant 0 : i32
    %c0_i32_1 = arith.constant 0 : i32
    %c0_i32_2 = arith.constant 0 : i32
    return %arg0, %c0_i32, %c0_i32_0, %c0_i32_1 : i32, i32, i32, i32
  }
  func.func @transform_2(%arg0: i32) -> (i32, i32, i32, i32) {
    %c0_i32 = arith.constant 0 : i32
    %c0_i32_0 = arith.constant 0 : i32
    %c0_i32_1 = arith.constant 0 : i32
    %c0_i32_2 = arith.constant 0 : i32
    return %arg0, %c0_i32, %c0_i32_0, %c0_i32_1 : i32, i32, i32, i32
  }
  func.func @transform_3(%arg0: i32) -> (i32, i32, i32, i32) {
    %c0_i32 = arith.constant 0 : i32
    %c0_i32_0 = arith.constant 0 : i32
    %c0_i32_1 = arith.constant 0 : i32
    %c0_i32_2 = arith.constant 0 : i32
    return %arg0, %c0_i32, %c0_i32_0, %c0_i32_1 : i32, i32, i32, i32
  }
}

module attributes {stable_mosaic.version = 11 : i64} {
  func.func @_ln_ffn_residual_kernel(%arg0: i32, %arg1: memref<1x4x64xf32, #tpu.memory_space<vmem>>, %arg2: memref<4x64xf32, #tpu.memory_space<vmem>>, %arg3: memref<4x64xf32, #tpu.memory_space<vmem>>, %arg4: memref<32x4xf32, #tpu.memory_space<vmem>>, %arg5: memref<4x32xf32, #tpu.memory_space<vmem>>, %arg6: memref<1x4x64xf32, #tpu.memory_space<vmem>>) attributes {dimension_semantics = [#tpu.dimension_semantics<parallel>], iteration_bounds = array<i64: 2>, scalar_prefetch = 0 : i64, scratch_operands = 0 : i64, tpu.core_type = #tpu.core_type<tc>, window_params = [{transform_indices = @transform_0, window_bounds = array<i64: 1, 4, 64>}, {pipeline_mode = #tpu.pipeline_mode<synchronous>, transform_indices = @transform_1, window_bounds = array<i64: 4, 64>}, {pipeline_mode = #tpu.pipeline_mode<synchronous>, transform_indices = @transform_2, window_bounds = array<i64: 4, 64>}, {pipeline_mode = #tpu.pipeline_mode<synchronous>, transform_indices = @transform_3, window_bounds = array<i64: 32, 4>}, {pipeline_mode = #tpu.pipeline_mode<synchronous>, transform_indices = @transform_4, window_bounds = array<i64: 4, 32>}, {transform_indices = @transform_5, window_bounds = array<i64: 1, 4, 64>}]} {
    %c0 = arith.constant 0 : index
    %c0_0 = arith.constant 0 : index
    %c0_1 = arith.constant 0 : index
    %0 = vector.load %arg1[%c0, %c0_0, %c0_1] : memref<1x4x64xf32, #tpu.memory_space<vmem>>, vector<1x4x64xf32>
    %1 = vector.shape_cast %0 : vector<1x4x64xf32> to vector<4x64xf32>
    %c0_2 = arith.constant 0 : index
    %c0_3 = arith.constant 0 : index
    %2 = vector.load %arg2[%c0_2, %c0_3] : memref<4x64xf32, #tpu.memory_space<vmem>>, vector<4x64xf32>
    %c0_4 = arith.constant 0 : index
    %c0_5 = arith.constant 0 : index
    %3 = vector.load %arg3[%c0_4, %c0_5] : memref<4x64xf32, #tpu.memory_space<vmem>>, vector<4x64xf32>
    %cst = arith.constant dense<0.000000e+00> : vector<4xf32>
    %4 = vector.multi_reduction <add>, %1, %cst [1] : vector<4x64xf32> to vector<4xf32>
    %5 = vector.shape_cast %4 : vector<4xf32> to vector<4x1xf32>
    %cst_6 = arith.constant dense<0.000000e+00> : vector<1xf32>
    %6 = vector.multi_reduction <add>, %5, %cst_6 [0] : vector<4x1xf32> to vector<1xf32>
    %7 = vector.shape_cast %6 : vector<1xf32> to vector<1x1xf32>
    %cst_7 = arith.constant 2.560000e+02 : f32
    %8 = vector.broadcast %cst_7 : f32 to vector<1x1xf32>
    %9 = arith.divf %7, %8 : vector<1x1xf32>
    %10 = vector.broadcast %9 : vector<1x1xf32> to vector<4x64xf32>
    %11 = arith.subf %1, %10 : vector<4x64xf32>
    %12 = arith.mulf %11, %11 : vector<4x64xf32>
    %cst_8 = arith.constant dense<0.000000e+00> : vector<4xf32>
    %13 = vector.multi_reduction <add>, %12, %cst_8 [1] : vector<4x64xf32> to vector<4xf32>
    %14 = vector.shape_cast %13 : vector<4xf32> to vector<4x1xf32>
    %cst_9 = arith.constant dense<0.000000e+00> : vector<1xf32>
    %15 = vector.multi_reduction <add>, %14, %cst_9 [0] : vector<4x1xf32> to vector<1xf32>
    %16 = vector.shape_cast %15 : vector<1xf32> to vector<1x1xf32>
    %cst_10 = arith.constant 2.560000e+02 : f32
    %17 = vector.broadcast %cst_10 : f32 to vector<1x1xf32>
    %18 = arith.divf %16, %17 : vector<1x1xf32>
    %cst_11 = arith.constant 9.99999974E-6 : f32
    %19 = vector.broadcast %cst_11 : f32 to vector<1x1xf32>
    %20 = arith.addf %18, %19 : vector<1x1xf32>
    %21 = math.rsqrt %20 : vector<1x1xf32>
    %22 = vector.broadcast %21 : vector<1x1xf32> to vector<4x64xf32>
    %23 = arith.mulf %11, %22 : vector<4x64xf32>
    %24 = arith.mulf %23, %2 : vector<4x64xf32>
    %25 = arith.addf %24, %3 : vector<4x64xf32>
    %c0_12 = arith.constant 0 : index
    %c0_13 = arith.constant 0 : index
    %26 = vector.load %arg4[%c0_12, %c0_13] : memref<32x4xf32, #tpu.memory_space<vmem>>, vector<32x4xf32>
    %cst_14 = arith.constant dense<0.000000e+00> : vector<32x64xf32>
    %27 = tpu.matmul %26, %25, %cst_14 {dimension_numbers = #tpu.dot_dimension_numbers<[1], [0], [0], [1], [0, 0, 1, 1], [], []>} : vector<32x4xf32>, vector<4x64xf32>, vector<32x64xf32> -> vector<32x64xf32>
    %28 = arith.mulf %27, %27 : vector<32x64xf32>
    %29 = arith.mulf %27, %28 : vector<32x64xf32>
    %cst_15 = arith.constant 4.471500e-02 : f32
    %30 = vector.broadcast %cst_15 : f32 to vector<32x64xf32>
    %31 = arith.mulf %30, %29 : vector<32x64xf32>
    %32 = arith.addf %27, %31 : vector<32x64xf32>
    %cst_16 = arith.constant 0.797884583 : f32
    %33 = vector.broadcast %cst_16 : f32 to vector<32x64xf32>
    %34 = arith.mulf %33, %32 : vector<32x64xf32>
    %35 = math.tanh %34 : vector<32x64xf32>
    %cst_17 = arith.constant 1.000000e+00 : f32
    %36 = vector.broadcast %cst_17 : f32 to vector<32x64xf32>
    %37 = arith.addf %36, %35 : vector<32x64xf32>
    %cst_18 = arith.constant 5.000000e-01 : f32
    %38 = vector.broadcast %cst_18 : f32 to vector<32x64xf32>
    %39 = arith.mulf %38, %37 : vector<32x64xf32>
    %40 = arith.mulf %27, %39 : vector<32x64xf32>
    %c0_19 = arith.constant 0 : index
    %c0_20 = arith.constant 0 : index
    %41 = vector.load %arg5[%c0_19, %c0_20] : memref<4x32xf32, #tpu.memory_space<vmem>>, vector<4x32xf32>
    %cst_21 = arith.constant dense<0.000000e+00> : vector<4x64xf32>
    %42 = tpu.matmul %41, %40, %cst_21 {dimension_numbers = #tpu.dot_dimension_numbers<[1], [0], [0], [1], [0, 0, 1, 1], [], []>} : vector<4x32xf32>, vector<32x64xf32>, vector<4x64xf32> -> vector<4x64xf32>
    %43 = arith.addf %42, %1 : vector<4x64xf32>
    %c0_22 = arith.constant 0 : index
    %c0_23 = arith.constant 0 : index
    %c0_24 = arith.constant 0 : index
    %44 = vector.load %arg6[%c0_22, %c0_23, %c0_24] : memref<1x4x64xf32, #tpu.memory_space<vmem>>, vector<1x4x64xf32>
    %45 = vector.shape_cast %44 : vector<1x4x64xf32> to vector<4x64xf32>
    %46 = vector.shape_cast %43 : vector<4x64xf32> to vector<1x4x64xf32>
    tpu.vector_store %arg6[%c0_22, %c0_23, %c0_24], %46 {strides = array<i32>} : memref<1x4x64xf32, #tpu.memory_space<vmem>>, vector<1x4x64xf32>,
    return
  }
  func.func @transform_0(%arg0: i32) -> (i32, i32, i32) {
    %c0_i32 = arith.constant 0 : i32
    %c0_i32_0 = arith.constant 0 : i32
    %c0_i32_1 = arith.constant 0 : i32
    return %arg0, %c0_i32, %c0_i32_0 : i32, i32, i32
  }
  func.func @transform_1(%arg0: i32) -> (i32, i32) {
    %c0_i32 = arith.constant 0 : i32
    %c0_i32_0 = arith.constant 0 : i32
    %c0_i32_1 = arith.constant 0 : i32
    return %c0_i32, %c0_i32_0 : i32, i32
  }
  func.func @transform_2(%arg0: i32) -> (i32, i32) {
    %c0_i32 = arith.constant 0 : i32
    %c0_i32_0 = arith.constant 0 : i32
    %c0_i32_1 = arith.constant 0 : i32
    return %c0_i32, %c0_i32_0 : i32, i32
  }
  func.func @transform_3(%arg0: i32) -> (i32, i32) {
    %c0_i32 = arith.constant 0 : i32
    %c0_i32_0 = arith.constant 0 : i32
    %c0_i32_1 = arith.constant 0 : i32
    return %c0_i32, %c0_i32_0 : i32, i32
  }
  func.func @transform_4(%arg0: i32) -> (i32, i32) {
    %c0_i32 = arith.constant 0 : i32
    %c0_i32_0 = arith.constant 0 : i32
    %c0_i32_1 = arith.constant 0 : i32
    return %c0_i32, %c0_i32_0 : i32, i32
  }
  func.func @transform_5(%arg0: i32) -> (i32, i32, i32) {
    %c0_i32 = arith.constant 0 : i32
    %c0_i32_0 = arith.constant 0 : i32
    %c0_i32_1 = arith.constant 0 : i32
    return %arg0, %c0_i32, %c0_i32_0 : i32, i32, i32
  }
}

module attributes {stable_mosaic.version = 11 : i64} {
  func.func @_proj_residual_kernel(%arg0: i32, %arg1: memref<1x4x64xf32, #tpu.memory_space<vmem>>, %arg2: memref<4x4xf32, #tpu.memory_space<vmem>>, %arg3: memref<1x4x64xf32, #tpu.memory_space<vmem>>, %arg4: memref<1x4x64xf32, #tpu.memory_space<vmem>>) attributes {dimension_semantics = [#tpu.dimension_semantics<parallel>], iteration_bounds = array<i64: 2>, scalar_prefetch = 0 : i64, scratch_operands = 0 : i64, tpu.core_type = #tpu.core_type<tc>, window_params = [{transform_indices = @transform_0, window_bounds = array<i64: 1, 4, 64>}, {pipeline_mode = #tpu.pipeline_mode<synchronous>, transform_indices = @transform_1, window_bounds = array<i64: 4, 4>}, {transform_indices = @transform_2, window_bounds = array<i64: 1, 4, 64>}, {transform_indices = @transform_3, window_bounds = array<i64: 1, 4, 64>}]} {
    %c0 = arith.constant 0 : index
    %c0_0 = arith.constant 0 : index
    %c0_1 = arith.constant 0 : index
    %0 = vector.load %arg1[%c0, %c0_0, %c0_1] : memref<1x4x64xf32, #tpu.memory_space<vmem>>, vector<1x4x64xf32>
    %1 = vector.shape_cast %0 : vector<1x4x64xf32> to vector<4x64xf32>
    %c0_2 = arith.constant 0 : index
    %c0_3 = arith.constant 0 : index
    %2 = vector.load %arg2[%c0_2, %c0_3] : memref<4x4xf32, #tpu.memory_space<vmem>>, vector<4x4xf32>
    %cst = arith.constant dense<0.000000e+00> : vector<4x64xf32>
    %3 = tpu.matmul %2, %1, %cst {dimension_numbers = #tpu.dot_dimension_numbers<[1], [0], [0], [1], [0, 0, 1, 1], [], []>} : vector<4x4xf32>, vector<4x64xf32>, vector<4x64xf32> -> vector<4x64xf32>
    %c0_4 = arith.constant 0 : index
    %c0_5 = arith.constant 0 : index
    %c0_6 = arith.constant 0 : index
    %4 = vector.load %arg3[%c0_4, %c0_5, %c0_6] : memref<1x4x64xf32, #tpu.memory_space<vmem>>, vector<1x4x64xf32>
    %5 = vector.shape_cast %4 : vector<1x4x64xf32> to vector<4x64xf32>
    %6 = arith.addf %3, %5 : vector<4x64xf32>
    %c0_7 = arith.constant 0 : index
    %c0_8 = arith.constant 0 : index
    %c0_9 = arith.constant 0 : index
    %7 = vector.load %arg4[%c0_7, %c0_8, %c0_9] : memref<1x4x64xf32, #tpu.memory_space<vmem>>, vector<1x4x64xf32>
    %8 = vector.shape_cast %7 : vector<1x4x64xf32> to vector<4x64xf32>
    %9 = vector.shape_cast %6 : vector<4x64xf32> to vector<1x4x64xf32>
    tpu.vector_store %arg4[%c0_7, %c0_8, %c0_9], %9 {strides = array<i32>} : memref<1x4x64xf32, #tpu.memory_space<vmem>>, vector<1x4x64xf32>,
    return
  }
  func.func @transform_0(%arg0: i32) -> (i32, i32, i32) {
    %c0_i32 = arith.constant 0 : i32
    %c0_i32_0 = arith.constant 0 : i32
    %c0_i32_1 = arith.constant 0 : i32
    return %arg0, %c0_i32, %c0_i32_0 : i32, i32, i32
  }
  func.func @transform_1(%arg0: i32) -> (i32, i32) {
    %c0_i32 = arith.constant 0 : i32
    %c0_i32_0 = arith.constant 0 : i32
    %c0_i32_1 = arith.constant 0 : i32
    return %c0_i32, %c0_i32_0 : i32, i32
  }
  func.func @transform_2(%arg0: i32) -> (i32, i32, i32) {
    %c0_i32 = arith.constant 0 : i32
    %c0_i32_0 = arith.constant 0 : i32
    %c0_i32_1 = arith.constant 0 : i32
    return %arg0, %c0_i32, %c0_i32_0 : i32, i32, i32
  }
  func.func @transform_3(%arg0: i32) -> (i32, i32, i32) {
    %c0_i32 = arith.constant 0 : i32
    %c0_i32_0 = arith.constant 0 : i32
    %c0_i32_1 = arith.constant 0 : i32
    return %arg0, %c0_i32, %c0_i32_0 : i32, i32, i32
  }
}

</mosaic_0001>

<bundles_post_ra>
// kernel: transformer_forward.8
= control target key start
LH: loop header
LB: loop body
LE: loop exit
PB: predicated region body
PF: predicated region fallthrough
CT: control target
= control target key end

     0   :  { %s924_s17 = smov 0   ;;  %s990_s0 = inlined_call_operand.vmem [shape: f32[2,4,64], index: 0, kind: input, shape index: {}]   ;;  %s991_s1 = inlined_call_operand.vmem [shape: f32[4,64], index: 1, kind: input, shape index: {}]   ;;  %s992_s2 = inlined_call_operand.vmem [shape: f32[4,64], index: 2, kind: input, shape index: {}]   ;;  %s993_s3 = inlined_call_operand.vmem [shape: f32[4,4], index: 3, kind: input, shape index: {}]   ;;  %s994_s4 = inlined_call_operand.vmem [shape: f32[4,1], index: 4, kind: input, shape index: {}]   ;;  %s995_s5 = inlined_call_operand.vmem [shape: f32[4,4], index: 5, kind: input, shape index: {}]   ;;  %s996_s6 = inlined_call_operand.vmem [shape: f32[4,1], index: 6, kind: input, shape index: {}]   ;;  %s997_s7 = inlined_call_operand.vmem [shape: f32[4,4], index: 7, kind: input, shape index: {}]   ;;  %s998_s8 = inlined_call_operand.vmem [shape: f32[4,1], index: 8, kind: input, shape index: {}]   ;;  %s999_s9 = inlined_call_operand.vmem [shape: f32[2,4,64], index: 9, kind: output, shape index: {0}]   ;;  %s1000_s10 = inlined_call_operand.vmem [shape: f32[2,4,64], index: 10, kind: output, shape index: {1}]   ;;  %s1001_s11 = inlined_call_operand.vmem [shape: f32[2,4,64], index: 11, kind: output, shape index: {2}]  }
   0x1 LB: > { %s800_s18 = sadd.s32 4294967295, %s859_s17   ;;  %p804_p0 = scmp.ge.s32.totalorder %s859_s17, 1  ;;  %s859_s17 = sphi %s924_s17, %s22_s17  }
   0x2   : > { %p341_p1 = scmp.lt.s32.totalorder %s859_s17, 3 }
   0x4   : > { %p342_p2 = pnand %p804_p0, %p341_p1 }
   0x5   : > { %p387_p3 = scmp.lt.s32.totalorder (!%p342_p2), %s800_s18, 1  ;;  %vm406_vm0 = vcmask (!%p342_p2), 519168   ;;  %vm410_vm1 = vcmask (!%p342_p2), 1043456   ;;  %v861_v14 = vmov (!%p342_p2), 0.0   ;;  %vm862_vm2 = vmmov (!%p342_p2), 0  }
   0x6   : > { %345 = sbr.rel (%p342_p2) target bundleno = 576 (0x240), region = 56  ;;  %823 = vmatprep.subr.mxu0 (!%p342_p2), %v861_v14  ;;  %828 = vmatprep.subr.mxu1 (!%p342_p2), %v861_v14  ;;  %v439_v15 = vld [vmem:[%s994_s4] sm:$0xf] (!%p342_p2)  ;;  %v863_v16 = vmov (!%p342_p2), 0   ;;  %vm445_vm3 = vcmask (!%p342_p2), 31744  }
   0x7   : > { %825 = vmatprep.mubr.msk.f32.mxu0 (!%p342_p2), %vm862_vm2, %v861_v14  ;;  %830 = vmatprep.mubr.msk.f32.mxu1 (!%p342_p2), %vm862_vm2, %v861_v14  ;;  %v605_v17 = vld [vmem:[%s998_s8] sm:$0xf] (!%p342_p2) }
   0x8   : > { %849 = vset.pattern.permute.xlu1 (!%p342_p2), %v863_v16  ;;  %850 = vset.pattern.permute.xlu0 (!%p342_p2), %v863_v16  ;;  %v524_v18 = vld [vmem:[%s996_s6] sm:$0xf] (!%p342_p2) }
   0x9   : > { %442 = vperm.xlu1 (!%p342_p2), %849, %v439_v15   ;;  %v404_v30 = vld [vmem:[%s991_s1] sm:$0xf] (!%p342_p2) }
   0xa   : > { %v405_v32 = vld [vmem:[%s992_s2] sm:$0xf] (!%p342_p2) }
   0xb   : > { %v438_v35 = vld [vmem:[%s993_s3] sm:$0xf] (!%p342_p2) }
   0xc   : > { %v523_v36 = vld [vmem:[%s995_s5] sm:$0xf] (!%p342_p2) }
   0xd   : > { %s1003_s18 = smov (!%p387_p3, %s800_s18), 1  ;;  %527 = vperm.xlu1 %849, %v524_v18   ;;  %v604_v37 = vld [vmem:[%s997_s7] sm:$0xf] }
   0xe   : > { %s932_s19 = sshll.u32 %s1003_s18, 2 }
   0xf   : > { %s390_s22 = scalar_lea.vmem %s990_s0, %s932_s19  ;;  %s394_s24 = scalar_lea.vmem %s999_s9, %s932_s19 }
  0x10   : > { %v403_v0 = vld [vmem:[%s390_s22] sm:$0xf]  ;;  %s398_s27 = scalar_lea.vmem %s1000_s10, %s932_s19  ;;  %s402_s30 = scalar_lea.vmem %s1001_s11, %s932_s19 }
  0x11   : > { %v407_v1 = vsel %vm406_vm0, %v403_v0, 0.0 }
  0x12   : > { %408 = vadd.xlane.f32.xlu0 %v407_v1 }
  0x88   : > { %v443_v38 = vpop.permute.xlu1 %442 }
  0x8c   : > { %v528_v39 = vpop.permute.xlu1 %527 }
  0x9f   : > { %v409_v2 = vpop.xlane.xlu0 %408 }
  0xa0   : > { %v411_v3 = vsel %vm410_vm1, %v409_v2, 0.0 }
  0xa1   : > { %v412_v4 = vrot.slane %v411_v3, 4 }
  0xa3   : > { %v413_v5 = vadd.f32 %v412_v4, %v411_v3 }
  0xa5   : > { %v414_v6 = vrot.slane %v413_v5, 2 }
  0xa7   : > { %v415_v7 = vadd.f32 %v414_v6, %v413_v5 }
  0xa9   : > { %v416_v8 = vrot.slane %v415_v7, 1 }
  0xab   : > { %v417_v9 = vadd.f32 %v416_v8, %v415_v7 }
  0xad   : > { %v419_v10 = vmul.f32 0.00390625, %v417_v9 }
  0xaf   : > { %v420_v11 = vsub.f32 %v403_v0, %v419_v10 }
  0xb1   : > { %v421_v12 = vmul.f32 %v420_v11, %v420_v11 }
  0xb3   : > { %v422_v13 = vsel %vm406_vm0, %v421_v12, 0.0 }
  0xb4   : > { %423 = vadd.xlane.f32.xlu0 %v422_v13 }
  0xca   : > { %608 = vperm.xlu0 %850, %v605_v17  }
 0x141   : > { %v424_v19 = vpop.xlane.xlu0 %423 }
 0x142   : > { %v425_v20 = vsel %vm410_vm1, %v424_v19, 0.0 }
 0x143   : > { %v426_v21 = vrot.slane %v425_v20, 4 }
 0x145   : > { %v427_v22 = vadd.f32 %v426_v21, %v425_v20 }
 0x147   : > { %v428_v23 = vrot.slane %v427_v22, 2 }
 0x149   : > { %v429_v24 = vadd.f32 %v428_v23, %v427_v22  ;;  %v609_v46 = vpop.permute.xlu0 %608 }
 0x14b   : > { %v430_v25 = vrot.slane %v429_v24, 1 }
 0x14d   : > { %v431_v26 = vadd.f32 %v430_v25, %v429_v24 }
 0x14f   : > { %v432_v27 = vmul.f32 0.00390625, %v431_v26 }
 0x151   : > { %v433_v28 = vadd.f32 1e-05, %v432_v27 }
 0x153   : > { %851 = vrsqrt.f32 %v433_v28 }
 0x15d   : > { %v852_v29 = vpop.eup %851 }
 0x15e   : > { %v435_v31 = vmul.f32 %v852_v29, %v420_v11 }
 0x160   : > { %v436_v33 = vmul.f32 %v435_v31, %v404_v30 }
 0x162   : > { %v437_v34 = vadd.f32 %v436_v33, %v405_v32 }
 0x164   : > { %824 = vmatpush3.msk.msra.mxu0 %vm410_vm1, %v437_v34  ;;  %829 = vmatpush3.msk.msra.mxu1 %vm410_vm1, %v437_v34 }
 0x165   : > { %826 = vmatmul.mubr.msk.f32.vlgmr.msra.gmra.mrb[0].mxu0 %vm445_vm3, %v438_v35  ;;  %833 = vmatprep.subr.mxu0 %v861_v14 }
 0x166   : > { %831 = vmatmul.mubr.msk.f32.vlgmr.msra.gmra.mrb[0].mxu1 %vm445_vm3, %v523_v36  ;;  %834 = vmatpush3.msk.msra.mxu0 %vm410_vm1, %v437_v34 }
 0x167   : > { %835 = vmatprep.mubr.msk.f32.mxu0 %vm862_vm2, %v861_v14 }
 0x169   : > { %836 = vmatmul.mubr.msk.f32.vlgmr.msra.gmra.mrb[2].mxu0 %vm445_vm3, %v604_v37 }
 0x238   : > { %v518_v40 = vpop.f32.mrb[0].mxu0 }
 0x239   : > { %v519_v41 = vadd.f32 %v518_v40, %v443_v38  ;;  %v827_v42 = vpop.f32.mrb[1].mxu0  ;;  %v599_v43 = vpop.f32.mrb[0].mxu1 }
 0x23a   : > { %v600_v44 = vadd.f32 %v599_v43, %v528_v39  ;;  %v832_v45 = vpop.f32.mrb[1].mxu1 }
 0x23b   : > { %522 = vst.msk [vmem:[%s394_s24] sm:$0xf] %vm406_vm0, %v519_v41 }
 0x23c   : > { %603 = vst.msk [vmem:[%s398_s27] sm:$0xf] %vm406_vm0, %v600_v44  ;;  %v680_v47 = vpop.f32.mrb[2].mxu0 }
 0x23d   : > { %v837_v48 = vpop.f32.mrb[3].mxu0  ;;  %v681_v49 = vadd.f32 %v680_v47, %v609_v46 }
 0x23f   : > { %684 = vst.msk [vmem:[%s402_s30] sm:$0xf] %vm406_vm0, %v681_v49 }
 0x240 PF: > { %s22_s17 = sadd.s32 1, %s859_s17  }
 0x241   : > { %p19_p4 = scmp.ge.s32.totalorder %s22_s17, 4  }
 0x243   :  { %21 = sbr.rel (!%p19_p4) target bundleno = 1 (0x1), region = 110 }

// kernel: transformer_forward.11
= control target key start
LH: loop header
LB: loop body
LE: loop exit
PB: predicated region body
PF: predicated region fallthrough
CT: control target
= control target key end

     0   :  { %s637_s18 = smov 0   ;;  %s698_s0 = inlined_call_operand.vmem [shape: f32[2,4,64], index: 0, kind: input, shape index: {}]   ;;  %s699_s1 = inlined_call_operand.vmem [shape: f32[4,64], index: 1, kind: input, shape index: {}]   ;;  %s700_s2 = inlined_call_operand.vmem [shape: f32[4,64], index: 2, kind: input, shape index: {}]   ;;  %s701_s3 = inlined_call_operand.vmem [shape: f32[32,4], index: 3, kind: input, shape index: {}]   ;;  %s702_s4 = inlined_call_operand.vmem [shape: f32[4,32], index: 4, kind: input, shape index: {}]   ;;  %s703_s5 = inlined_call_operand.vmem [shape: f32[2,4,64], index: 5, kind: output, shape index: {}]  }
   0x1 LB: > { %s525_s19 = sadd.s32 4294967295, %s602_s18   ;;  %p529_p0 = scmp.ge.s32.totalorder %s602_s18, 1  ;;  %s602_s18 = sphi %s637_s18, %s15_s18  }
   0x2   : > { %p186_p1 = scmp.lt.s32.totalorder %s602_s18, 3 }
   0x4   : > { %p187_p2 = pnand %p529_p0, %p186_p1 }
   0x5   : > { %p212_p3 = scmp.lt.s32.totalorder (!%p187_p2), %s525_s19, 1  ;;  %vm223_vm0 = vcmask (!%p187_p2), 519168   ;;  %vm227_vm1 = vcmask (!%p187_p2), 1043456   ;;  %v255_v14 = vld [vmem:[%s701_s3] sm:$0xff] (!%p187_p2)  ;;  %vm259_vm2 = vcmask (!%p187_p2), 31744   ;;  %v256_v31 = vld [vmem:[%s701_s3 + $0x8] sm:$0xff] (!%p187_p2) }
   0x6   : > { %190 = sbr.rel (%p187_p2) target bundleno = 822 (0x336), region = 40  ;;  %552 = vmatprep.mubr.msk.f32.mxu0 (!%p187_p2), %vm259_vm2, %v255_v14  ;;  %v221_v26 = vld [vmem:[%s699_s1] sm:$0xf] (!%p187_p2)  ;;  %v257_v32 = vld [vmem:[%s701_s3 + $0x10] sm:$0xff] (!%p187_p2)  ;;  %v258_v33 = vld [vmem:[%s701_s3 + $0x18] sm:$0xff] (!%p187_p2)  ;;  %v604_v34 = vmov (!%p187_p2), 0.0|0.0  }
   0x7   : > { %v222_v28 = vld [vmem:[%s700_s2] sm:$0xf] (!%p187_p2)  ;;  %569 = vmatprep.subr.bf16.mxu1 (!%p187_p2), %v604_v34  ;;  %vm605_vm3 = vmmov (!%p187_p2), 0   ;;  %v606_v35 = vmov (!%p187_p2), 0.0   ;;  %vm397_vm4 = vcmask (!%p187_p2), 261120  }
   0x8   : > { %566 = vmatprep.mubr.msk.f32.mxu1 (!%p187_p2), %vm605_vm3, %v606_v35 }
   0xd   : > { %s705_s19 = smov (!%p212_p3, %s525_s19), 1 }
   0xe   : > { %s530_s20 = sshll.u32 %s705_s19, 2 }
   0xf   : > { %s215_s23 = scalar_lea.vmem %s698_s0, %s530_s20  ;;  %s219_s15 = scalar_lea.vmem %s703_s5, %s530_s20 }
  0x10   : > { %v653_v0 = vld [vmem:[%s215_s23] sm:$0xf] }
  0x11   : > { %v224_v1 = vsel %vm223_vm0, %v653_v0, 0.0 }
  0x12   : > { %225 = vadd.xlane.f32.xlu0 %v224_v1 }
  0x9f   : > { %v226_v2 = vpop.xlane.xlu0 %225 }
  0xa0   : > { %v228_v3 = vsel %vm227_vm1, %v226_v2, 0.0 }
  0xa1   : > { %v229_v4 = vrot.slane %v228_v3, 4 }
  0xa3   : > { %v230_v5 = vadd.f32 %v229_v4, %v228_v3 }
  0xa5   : > { %v231_v6 = vrot.slane %v230_v5, 2 }
  0xa7   : > { %v232_v7 = vadd.f32 %v231_v6, %v230_v5 }
  0xa9   : > { %v233_v8 = vrot.slane %v232_v7, 1 }
  0xab   : > { %v234_v9 = vadd.f32 %v233_v8, %v232_v7 }
  0xad   : > { %v236_v10 = vmul.f32 0.00390625, %v234_v9 }
  0xaf   : > { %v237_v11 = vsub.f32 %v653_v0, %v236_v10 }
  0xb1   : > { %v238_v12 = vmul.f32 %v237_v11, %v237_v11 }
  0xb3   : > { %v239_v13 = vsel %vm223_vm0, %v238_v12, 0.0 }
  0xb4   : > { %240 = vadd.xlane.f32.xlu0 %v239_v13 }
 0x141   : > { %v241_v15 = vpop.xlane.xlu0 %240 }
 0x142   : > { %v242_v16 = vsel %vm227_vm1, %v241_v15, 0.0  ;;  %v396_v15 = vld [vmem:[%s702_s4] sm:$0xf] }
 0x143   : > { %v243_v17 = vrot.slane %v242_v16, 4 }
 0x145   : > { %v244_v18 = vadd.f32 %v243_v17, %v242_v16 }
 0x147   : > { %v245_v19 = vrot.slane %v244_v18, 2 }
 0x149   : > { %v246_v20 = vadd.f32 %v245_v19, %v244_v18 }
 0x14b   : > { %v247_v21 = vrot.slane %v246_v20, 1 }
 0x14d   : > { %v248_v22 = vadd.f32 %v247_v21, %v246_v20 }
 0x14f   : > { %v249_v23 = vmul.f32 0.00390625, %v248_v22 }
 0x151   : > { %v250_v24 = vadd.f32 1e-05, %v249_v23 }
 0x153   : > { %586 = vrsqrt.f32 %v250_v24 }
 0x15d   : > { %v587_v25 = vpop.eup %586 }
 0x15e   : > { %v252_v27 = vmul.f32 %v587_v25, %v237_v11 }
 0x160   : > { %v253_v29 = vmul.f32 %v252_v27, %v221_v26 }
 0x162   : > { %v254_v30 = vadd.f32 %v253_v29, %v222_v28 }
 0x164   : > { %550 = vmatprep.subr.msk.mxu0 %vm227_vm1, %v254_v30 }
 0x165   : > { %551 = vmatpush3.msk.msra.mxu0 %vm227_vm1, %v254_v30 }
 0x166   : > { %553 = vmatmul.mubr.msk.f32.vlgmr.msra.gmra.mrb[0].mxu0 %vm259_vm2, %v256_v31 }
 0x167   : > { %555 = vmatprep.mubr.msk.f32.mxu0 %vm259_vm2, %v257_v32 }
 0x16a   : > { %556 = vmatmul.mubr.msk.f32.gmra.mrb[2].mxu0 %vm259_vm2, %v258_v33 }
 0x239   : > { %v554_v36 = vpop.f32.mrb[0].mxu0 }
 0x23a   : > { %v361_v37 = vmul.f32 %v554_v36, %v554_v36  ;;  %v341_v38 = vpop.f32.mrb[1].mxu0 }
 0x23b   : > { %v360_v39 = vmul.f32 %v341_v38, %v341_v38 }
 0x23c   : > { %v365_v40 = vmul.f32 %v554_v36, %v361_v37 }
 0x23d   : > { %v364_v41 = vmul.f32 %v360_v39, %v341_v38  ;;  %v557_v42 = vpop.f32.mrb[2].mxu0 }
 0x23e   : > { %v369_v43 = vmul.f32 0.044715, %v365_v40  ;;  %v363_v44 = vmul.f32 %v557_v42, %v557_v42  ;;  %v351_v45 = vpop.f32.mrb[3].mxu0 }
 0x23f   : > { %v368_v46 = vmul.f32 0.044715, %v364_v41  ;;  %v362_v47 = vmul.f32 %v351_v45, %v351_v45 }
 0x240   : > { %v373_v48 = vadd.f32 %v554_v36, %v369_v43  ;;  %v367_v49 = vmul.f32 %v557_v42, %v363_v44 }
 0x241   : > { %v372_v50 = vadd.f32 %v368_v46, %v341_v38  ;;  %v366_v51 = vmul.f32 %v362_v47, %v351_v45 }
 0x242   : > { %v377_v52 = vmul.f32 0.7978846, %v373_v48  ;;  %v371_v53 = vmul.f32 0.044715, %v367_v49 }
 0x243   : > { %v376_v54 = vmul.f32 0.7978846, %v372_v50  ;;  %v370_v55 = vmul.f32 0.044715, %v366_v51 }
 0x244   : > { %588 = vtanh.f32 %v377_v52  ;;  %v375_v56 = vadd.f32 %v557_v42, %v371_v53 }
 0x245   : > { %590 = vtanh.f32 %v376_v54  ;;  %v374_v57 = vadd.f32 %v370_v55, %v351_v45 }
 0x246   : > { %v379_v58 = vmul.f32 0.7978846, %v375_v56 }
 0x247   : > { %v378_v59 = vmul.f32 0.7978846, %v374_v57 }
 0x248   : > { %592 = vtanh.f32 %v379_v58 }
 0x249   : > { %594 = vtanh.f32 %v378_v59 }
 0x24e   : > { %v589_v60 = vpop.eup %588 }
 0x24f   : > { %v591_v61 = vpop.eup %590  ;;  %v385_v62 = vadd.f32 1.0, %v589_v60 }
 0x250   : > { %v384_v63 = vadd.f32 1.0, %v591_v61 }
 0x251   : > { %v389_v1 = vmul.f32 0.5, %v385_v62 }
 0x252   : > { %v593_v2 = vpop.eup %592  ;;  %v388_v3 = vmul.f32 0.5, %v384_v63 }
 0x253   : > { %v595_v4 = vpop.eup %594  ;;  %v387_v5 = vadd.f32 1.0, %v593_v2  ;;  %v393_v6 = vmul.f32 %v554_v36, %v389_v1 }
 0x254   : > { %v386_v7 = vadd.f32 1.0, %v595_v4  ;;  %v392_v8 = vmul.f32 %v388_v3, %v341_v38 }
 0x255   : > { %v391_v9 = vmul.f32 0.5, %v387_v5 }
 0x256   : > { %v390_v10 = vmul.f32 0.5, %v386_v7  ;;  %v570_v11 = vpack.c.bf16 %v393_v6, %v392_v8 }
 0x257   : > { %v395_v12 = vmul.f32 %v557_v42, %v391_v9 }
 0x258   : > { %v394_v13 = vmul.f32 %v390_v10, %v351_v45  ;;  %571 = vmatpush3.bf16.msra.mxu1 %v570_v11 }
 0x259   : > { %572 = vmatprep.subr.bf16.mxu1 %v604_v34 }
 0x25a   : > { %v573_v14 = vpack.c.bf16 %v395_v12, %v394_v13 }
 0x25c   : > { %574 = vmatpush3.bf16.msra.mxu1 %v573_v14 }
 0x25f   : > { %567 = vmatmul.mubr.msk.f32.vlgmr.msra.gmra.mrb[0].mxu1 %vm397_vm4, %v396_v15 }
 0x332   : > { %v467_v16 = vpop.f32.mrb[0].mxu1 }
 0x333   : > { %v468_v17 = vadd.f32 %v467_v16, %v653_v0  ;;  %v568_v18 = vpop.f32.mrb[1].mxu1 }
 0x335   : > { %471 = vst.msk [vmem:[%s219_s15] sm:$0xf] %vm223_vm0, %v468_v17 }
 0x336 PF: > { %s15_s18 = sadd.s32 1, %s602_s18  }
 0x337   : > { %p12_p4 = scmp.ge.s32.totalorder %s15_s18, 4  }
 0x339   :  { %14 = sbr.rel (!%p12_p4) target bundleno = 1 (0x1), region = 70 }

// kernel: transformer_forward.10
= control target key start
LH: loop header
LB: loop body
LE: loop exit
PB: predicated region body
PF: predicated region fallthrough
CT: control target
= control target key end

     0   :  { %s390_s12 = smov 0   ;;  %s413_s0 = inlined_call_operand.vmem [shape: f32[2,4,64], index: 0, kind: input, shape index: {}]   ;;  %s414_s1 = inlined_call_operand.vmem [shape: f32[4,4], index: 1, kind: input, shape index: {}]   ;;  %s415_s2 = inlined_call_operand.vmem [shape: f32[2,4,64], index: 2, kind: input, shape index: {}]   ;;  %s416_s3 = inlined_call_operand.vmem [shape: f32[2,4,64], index: 3, kind: output, shape index: {}]  }
   0x1 LB: > { %s331_s13 = sadd.s32 4294967295, %s366_s12   ;;  %p335_p0 = scmp.ge.s32.totalorder %s366_s12, 1  ;;  %s366_s12 = sphi %s390_s12, %s13_s12  }
   0x2   : > { %p145_p1 = scmp.lt.s32.totalorder %s366_s12, 3 }
   0x4   : > { %p146_p2 = pnand %p335_p0, %p145_p1 }
   0x5   : > { %p171_p3 = scmp.lt.s32.totalorder (!%p146_p2), %s331_s13, 1  ;;  %v368_v0 = vmov (!%p146_p2), 0.0   ;;  %vm369_vm0 = vmmov (!%p146_p2), 0   ;;  %vm190_vm1 = vcmask (!%p146_p2), 1043456   ;;  %v184_v1 = vld [vmem:[%s414_s1] sm:$0xf] (!%p146_p2) }
   0x6   : > { %149 = sbr.rel (%p146_p2) target bundleno = 233 (0xe9), region = 32  ;;  %345 = vmatprep.subr.mxu0 (!%p146_p2), %v368_v0  ;;  %347 = vmatprep.mubr.msk.f32.mxu0 (!%p146_p2), %vm369_vm0, %v368_v0  ;;  %vm186_vm2 = vcmask (!%p146_p2), 31744   ;;  %vm264_vm3 = vcmask (!%p146_p2), 519168  }
   0xd   : > { %s418_s13 = smov (!%p171_p3, %s331_s13), 1 }
   0xe   : > { %s336_s14 = sshll.u32 %s418_s13, 2 }
   0xf   : > { %s174_s17 = scalar_lea.vmem %s413_s0, %s336_s14  ;;  %s178_s22 = scalar_lea.vmem %s415_s2, %s336_s14 }
  0x10   : > { %v183_v2 = vld [vmem:[%s174_s17] sm:$0xf]  ;;  %s182_s25 = scalar_lea.vmem %s416_s3, %s336_s14 }
  0x11   : > { %346 = vmatpush3.msk.msra.mxu0 %vm190_vm1, %v183_v2  ;;  %v185_v3 = vld [vmem:[%s178_s22] sm:$0xf] }
  0x12   : > { %348 = vmatmul.mubr.msk.f32.vlgmr.msra.gmra.mrb[0].mxu0 %vm186_vm2, %v184_v1 }
  0xe5   : > { %v260_v4 = vpop.f32.mrb[0].mxu0 }
  0xe6   : > { %v261_v5 = vadd.f32 %v260_v4, %v185_v3  ;;  %v349_v6 = vpop.f32.mrb[1].mxu0 }
  0xe8   : > { %265 = vst.msk [vmem:[%s182_s25] sm:$0xf] %vm264_vm3, %v261_v5 }
  0xe9 PF: > { %s13_s12 = sadd.s32 1, %s366_s12  }
  0xea   : > { %p10_p4 = scmp.ge.s32.totalorder %s13_s12, 4  }
  0xec   :  { %12 = sbr.rel (!%p10_p4) target bundleno = 1 (0x1), region = 65 }

// kernel: transformer_forward.9
= control target key start
LH: loop header
LB: loop body
LE: loop exit
PB: predicated region body
PF: predicated region fallthrough
CT: control target
= control target key end

     0   :  { %s1874_s12 = smov 0   ;;  %s2049_s0 = inlined_call_operand.vmem [shape: f32[2,8,4,8], index: 0, kind: input, shape index: {}]   ;;  %s2050_s1 = inlined_call_operand.vmem [shape: f32[2,8,4,8], index: 1, kind: input, shape index: {}]   ;;  %s2051_s2 = inlined_call_operand.vmem [shape: f32[2,8,4,8], index: 2, kind: input, shape index: {}]   ;;  %s2052_s3 = inlined_call_operand.vmem [shape: f32[2,8,4,8], index: 3, kind: output, shape index: {}]  }
   0x1 LB: > { %s1639_s13 = sadd.s32 4294967295, %s1850_s12   ;;  %p1643_p0 = scmp.ge.s32.totalorder %s1850_s12, 1  ;;  %s1850_s12 = sphi %s1874_s12, %s13_s12  }
   0x2   : > { %p157_p1 = scmp.lt.s32.totalorder %s1850_s12, 3 }
   0x4   : > { %p158_p2 = pnand %p1643_p0, %p157_p1 }
   0x5   : > { %p191_p3 = scmp.lt.s32.totalorder (!%p158_p2), %s1639_s13, 1  ;;  %v1852_v0 = vmov (!%p158_p2), 0.0   ;;  %vm1853_vm0 = vmmov (!%p158_p2), 0   ;;  %vm235_vm1 = vcmask (!%p158_p2), 64512   ;;  %vm852_vm2 = vcmask (!%p158_p2), 27648  }
   0x6   : > { %161 = sbr.rel (%p158_p2) target bundleno = 777 (0x309), region = 32  ;;  %1722 = vmatprep.subr.mxu0 (!%p158_p2), %v1852_v0  ;;  %1724 = vmatprep.mubr.msk.f32.mxu0 (!%p158_p2), %vm1853_vm0, %v1852_v0  ;;  %vm945_vm3 = vcmask (!%p158_p2), 1043456   ;;  %vm941_vm4 = vcmask (!%p158_p2), 31744   ;;  %vm1551_vm5 = vcmask (!%p158_p2), 60416  }
   0x7   : > { %1727 = vmatprep.subr.mxu1 (!%p158_p2), %v1852_v0  ;;  %1729 = vmatprep.mubr.msk.f32.mxu1 (!%p158_p2), %vm1853_vm0, %v1852_v0 }
   0xd   : > { %s2054_s13 = smov (!%p191_p3, %s1639_s13), 1 }
   0xe   : > { %s1888_s14 = sshll.u32 %s2054_s13, 5 }
   0xf   : > { %s1894_s17 = scalar_lea.vmem %s2050_s1, %s1888_s14  ;;  %s1900_s20 = scalar_lea.vmem %s2049_s0, %s1888_s14 }
  0x10   : > { %v219_v1 = vld [vmem:[%s1894_s17] sm:$0xf]  ;;  %v220_v2 = vld [vmem:[%s1894_s17 + $0x4] sm:$0xf]  ;;  %v221_v5 = vld [vmem:[%s1894_s17 + $0x8] sm:$0xf]  ;;  %s1987_s23 = scalar_lea.vmem %s2051_s2, %s1888_s14  ;;  %s210_s26 = scalar_lea.vmem %s2052_s3, %s1888_s14 }
  0x11   : > { %1723 = vmatpush3.xpose.msk.msra.mxu0 %vm235_vm1, %v219_v1  ;;  %v211_v3 = vld [vmem:[%s1900_s20] sm:$0xf]  ;;  %1728 = vmatpush3.xpose.msk.msra.mxu1 %vm235_vm1, %v220_v2  ;;  %v212_v4 = vld [vmem:[%s1900_s20 + $0x4] sm:$0xf]  ;;  %v222_v6 = vld [vmem:[%s1894_s17 + $0xc] sm:$0xf] }
  0x12   : > { %1732 = vmatprep.subr.mxu0 %v1852_v0  ;;  %1737 = vmatprep.subr.mxu1 %v1852_v0  ;;  %v213_v7 = vld [vmem:[%s1900_s20 + $0x8] sm:$0xf]  ;;  %v223_v8 = vld [vmem:[%s1894_s17 + $0x10] sm:$0xf]  ;;  %v214_v9 = vld [vmem:[%s1900_s20 + $0xc] sm:$0xf] }
  0x13   : > { %v224_v10 = vld [vmem:[%s1894_s17 + $0x14] sm:$0xf]  ;;  %v215_v11 = vld [vmem:[%s1900_s20 + $0x10] sm:$0xf]  ;;  %v225_v12 = vld [vmem:[%s1894_s17 + $0x18] sm:$0xf] }
  0x14   : > { %1725 = vmatmul.mubr.msk.f32.vlgmr.msra.gmra.mrb[0].mxu0 %vm235_vm1, %v211_v3  ;;  %1730 = vmatmul.mubr.msk.f32.vlgmr.msra.gmra.mrb[0].mxu1 %vm235_vm1, %v212_v4  ;;  %v216_v13 = vld [vmem:[%s1900_s20 + $0x14] sm:$0xf]  ;;  %v226_v14 = vld [vmem:[%s1894_s17 + $0x1c] sm:$0xf]  ;;  %v217_v15 = vld [vmem:[%s1900_s20 + $0x18] sm:$0xf] }
  0x15   : > { %1733 = vmatpush3.xpose.msk.msra.mxu0 %vm235_vm1, %v221_v5  ;;  %1734 = vmatprep.mubr.msk.f32.mxu0 %vm1853_vm0, %v1852_v0  ;;  %v218_v16 = vld [vmem:[%s1900_s20 + $0x1c] sm:$0xf] }
  0x16   : > { %1742 = vmatprep.subr.mxu0 %v1852_v0  ;;  %1738 = vmatpush3.xpose.msk.msra.mxu1 %vm235_vm1, %v222_v6 }
  0x17   : > { %1739 = vmatprep.mubr.msk.f32.mxu1 %vm1853_vm0, %v1852_v0  ;;  %1747 = vmatprep.subr.mxu1 %v1852_v0 }
  0x18   : > { %1735 = vmatmul.mubr.msk.f32.vlgmr.msra.gmra.mrb[2].mxu0 %vm235_vm1, %v213_v7 }
  0x19   : > { %1743 = vmatpush3.xpose.msk.msra.mxu0 %vm235_vm1, %v223_v8  ;;  %1744 = vmatprep.mubr.msk.f32.mxu0 %vm1853_vm0, %v1852_v0 }
  0x1a   : > { %1740 = vmatmul.mubr.msk.f32.vlgmr.msra.gmra.mrb[2].mxu1 %vm235_vm1, %v214_v9  ;;  %1752 = vmatprep.subr.mxu0 %v1852_v0 }
  0x1b   : > { %1748 = vmatpush3.xpose.msk.msra.mxu1 %vm235_vm1, %v224_v10  ;;  %1749 = vmatprep.mubr.msk.f32.mxu1 %vm1853_vm0, %v1852_v0 }
  0x1c   : > { %1745 = vmatmul.mubr.msk.f32.vlgmr.msra.gmra.mrb[4].mxu0 %vm235_vm1, %v215_v11  ;;  %1757 = vmatprep.subr.mxu1 %v1852_v0 }
  0x1d   : > { %1753 = vmatpush3.xpose.msk.msra.mxu0 %vm235_vm1, %v225_v12  ;;  %1754 = vmatprep.mubr.msk.f32.mxu0 %vm1853_vm0, %v1852_v0 }
  0x1e   : > { %1750 = vmatmul.mubr.msk.f32.vlgmr.msra.gmra.mrb[4].mxu1 %vm235_vm1, %v216_v13  ;;  %1762 = vmatprep.subr.mxu0 %v1852_v0 }
  0x1f   : > { %1758 = vmatpush3.xpose.msk.msra.mxu1 %vm235_vm1, %v226_v14  ;;  %1759 = vmatprep.mubr.msk.f32.mxu1 %vm1853_vm0, %v1852_v0 }
  0x20   : > { %1755 = vmatmul.mubr.msk.f32.vlgmr.msra.gmra.mrb[6].mxu0 %vm235_vm1, %v217_v15  ;;  %1767 = vmatprep.subr.mxu1 %v1852_v0 }
  0x21   : > { %1764 = vmatprep.mubr.msk.f32.mxu0 %vm1853_vm0, %v1852_v0 }
  0x22   : > { %1760 = vmatmul.mubr.msk.f32.vlgmr.msra.gmra.mrb[6].mxu1 %vm235_vm1, %v218_v16 }
  0x23   : > { %1769 = vmatprep.mubr.msk.f32.mxu1 %vm1853_vm0, %v1852_v0 }
  0xe7   : > { %v308_v17 = vpop.f32.mrb[0].mxu0  ;;  %v384_v18 = vpop.f32.mrb[0].mxu1 }
  0xe8   : > { %v844_v19 = vmul.f32 0.25, %v308_v17  ;;  %v1726_v20 = vpop.f32.mrb[1].mxu0  ;;  %v845_v21 = vmul.f32 0.25, %v384_v18  ;;  %v1731_v22 = vpop.f32.mrb[1].mxu1 }
  0xea   : > { %v853_v23 = vsel %vm852_vm2, %v844_v19, -inf  ;;  %v856_v27 = vsel %vm852_vm2, %v845_v21, -inf }
  0xeb   : > { %854 = vmax.xlane.f32.xlu0 %v853_v23  ;;  %v460_v24 = vpop.f32.mrb[2].mxu0 }
  0xec   : > { %v846_v25 = vmul.f32 0.25, %v460_v24  ;;  %v1736_v26 = vpop.f32.mrb[3].mxu0 }
  0xed   : > { %v536_v28 = vpop.f32.mrb[2].mxu1  ;;  %v227_v26 = vld [vmem:[%s1987_s23] sm:$0xf] }
  0xee   : > { %v847_v29 = vmul.f32 0.25, %v536_v28  ;;  %v859_v30 = vsel %vm852_vm2, %v846_v25, -inf  ;;  %v1741_v31 = vpop.f32.mrb[3].mxu1  ;;  %1763 = vmatpush3.msk.msra.mxu0 %vm945_vm3, %v227_v26 }
  0xef   : > { %857 = vmax.xlane.f32.xlu0 %v856_v27  ;;  %860 = vmax.xlane.f32.xlu1 %v859_v30  ;;  %v612_v32 = vpop.f32.mrb[4].mxu0  ;;  %v228_v27 = vld [vmem:[%s1987_s23 + $0x4] sm:$0xf] }
  0xf0   : > { %v848_v33 = vmul.f32 0.25, %v612_v32  ;;  %v1746_v34 = vpop.f32.mrb[5].mxu0  ;;  %v862_v35 = vsel %vm852_vm2, %v847_v29, -inf  ;;  %1772 = vmatprep.subr.mxu0 %v1852_v0  ;;  %1768 = vmatpush3.msk.msra.mxu1 %vm945_vm3, %v228_v27 }
  0xf1   : > { %v688_v36 = vpop.f32.mrb[4].mxu1  ;;  %1777 = vmatprep.subr.mxu1 %v1852_v0 }
  0xf2   : > { %v849_v37 = vmul.f32 0.25, %v688_v36  ;;  %v865_v38 = vsel %vm852_vm2, %v848_v33, -inf  ;;  %v1751_v39 = vpop.f32.mrb[5].mxu1  ;;  %v229_v36 = vld [vmem:[%s1987_s23 + $0x8] sm:$0xf] }
  0xf3   : > { %863 = vmax.xlane.f32.xlu1 %v862_v35  ;;  %866 = vmax.xlane.f32.xlu0 %v865_v38  ;;  %v764_v40 = vpop.f32.mrb[6].mxu0 }
  0xf4   : > { %v850_v41 = vmul.f32 0.25, %v764_v40  ;;  %v868_v42 = vsel %vm852_vm2, %v849_v37, -inf  ;;  %v1756_v43 = vpop.f32.mrb[7].mxu0 }
  0xf5   : > { %v840_v44 = vpop.f32.mrb[6].mxu1 }
  0xf6   : > { %v851_v45 = vmul.f32 0.25, %v840_v44  ;;  %v871_v46 = vsel %vm852_vm2, %v850_v41, -inf  ;;  %v1761_v47 = vpop.f32.mrb[7].mxu1  ;;  %v231_v44 = vld [vmem:[%s1987_s23 + $0x10] sm:$0xf] }
  0xf7   : > { %869 = vmax.xlane.f32.xlu1 %v868_v42  ;;  %872 = vmax.xlane.f32.xlu0 %v871_v46  ;;  %v230_v42 = vld [vmem:[%s1987_s23 + $0xc] sm:$0xf] }
  0xf8   : > { %v874_v48 = vsel %vm852_vm2, %v851_v45, -inf }
  0xfb   : > { %875 = vmax.xlane.f32.xlu1 %v874_v48  ;;  %v232_v48 = vld [vmem:[%s1987_s23 + $0x14] sm:$0xf] }
 0x178   : > { %v855_v49 = vpop.xlane.xlu0 %854 }
 0x179   : > { %v877_v50 = vsub.f32 %v844_v19, %v855_v49 }
 0x17b   : > { %v885_v51 = vmul.f32 1.442695, %v877_v50  ;;  %v233_v50 = vld [vmem:[%s1987_s23 + $0x18] sm:$0xf] }
 0x17c   : > { %v858_v52 = vpop.xlane.xlu0 %857  ;;  %v861_v53 = vpop.xlane.xlu1 %860 }
 0x17d   : > { %1812 = vpow2.f32 %v885_v51  ;;  %v878_v54 = vsub.f32 %v845_v21, %v858_v52  ;;  %v879_v55 = vsub.f32 %v846_v25, %v861_v53 }
 0x17f   : > { %v887_v56 = vmul.f32 1.442695, %v878_v54  ;;  %v889_v57 = vmul.f32 1.442695, %v879_v55  ;;  %v234_v54 = vld [vmem:[%s1987_s23 + $0x1c] sm:$0xf] }
 0x180   : > { %v864_v58 = vpop.xlane.xlu1 %863  ;;  %v867_v59 = vpop.xlane.xlu0 %866 }
 0x181   : > { %1814 = vpow2.f32 %v887_v56  ;;  %v880_v60 = vsub.f32 %v847_v29, %v864_v58  ;;  %v881_v61 = vsub.f32 %v848_v33, %v867_v59 }
 0x182   : > { %1816 = vpow2.f32 %v889_v57 }
 0x183   : > { %v891_v62 = vmul.f32 1.442695, %v880_v60  ;;  %v893_v63 = vmul.f32 1.442695, %v881_v61 }
 0x184   : > { %v870_v1 = vpop.xlane.xlu1 %869  ;;  %v873_v2 = vpop.xlane.xlu0 %872 }
 0x185   : > { %1818 = vpow2.f32 %v891_v62  ;;  %v882_v3 = vsub.f32 %v849_v37, %v870_v1  ;;  %v883_v4 = vsub.f32 %v850_v41, %v873_v2 }
 0x186   : > { %1820 = vpow2.f32 %v893_v63 }
 0x187   : > { %v1813_v5 = vpop.eup %1812  ;;  %v895_v6 = vmul.f32 1.442695, %v882_v3  ;;  %v897_v7 = vmul.f32 1.442695, %v883_v4 }
 0x188   : > { %v876_v8 = vpop.xlane.xlu1 %875  ;;  %v901_v9 = vsel %vm852_vm2, %v1813_v5, 0.0 }
 0x189   : > { %1822 = vpow2.f32 %v895_v6  ;;  %v884_v10 = vsub.f32 %v851_v45, %v876_v8  ;;  %902 = vadd.xlane.f32.xlu0 %v901_v9 }
 0x18a   : > { %1824 = vpow2.f32 %v897_v7 }
 0x18b   : > { %v1815_v11 = vpop.eup %1814  ;;  %v899_v12 = vmul.f32 1.442695, %v884_v10 }
 0x18c   : > { %v1817_v13 = vpop.eup %1816  ;;  %v904_v14 = vsel %vm852_vm2, %v1815_v11, 0.0 }
 0x18d   : > { %1826 = vpow2.f32 %v899_v12  ;;  %905 = vadd.xlane.f32.xlu1 %v904_v14  ;;  %v907_v15 = vsel %vm852_vm2, %v1817_v13, 0.0 }
 0x18e   : > { %908 = vadd.xlane.f32.xlu0 %v907_v15 }
 0x18f   : > { %v1819_v16 = vpop.eup %1818 }
 0x190   : > { %v1821_v17 = vpop.eup %1820  ;;  %v910_v18 = vsel %vm852_vm2, %v1819_v16, 0.0 }
 0x191   : > { %911 = vadd.xlane.f32.xlu1 %v910_v18  ;;  %v913_v19 = vsel %vm852_vm2, %v1821_v17, 0.0 }
 0x192   : > { %914 = vadd.xlane.f32.xlu0 %v913_v19 }
 0x193   : > { %v1971_v20 = vpop.eup %1822 }
 0x194   : > { %v1973_v21 = vpop.eup %1824  ;;  %v916_v22 = vsel %vm852_vm2, %v1971_v20, 0.0 }
 0x195   : > { %917 = vadd.xlane.f32.xlu1 %v916_v22  ;;  %v919_v23 = vsel %vm852_vm2, %v1973_v21, 0.0 }
 0x196   : > { %920 = vadd.xlane.f32.xlu0 %v919_v23 }
 0x197   : > { %v1979_v24 = vpop.eup %1826 }
 0x198   : > { %v922_v25 = vsel %vm852_vm2, %v1979_v24, 0.0 }
 0x199   : > { %923 = vadd.xlane.f32.xlu1 %v922_v25 }
 0x216   : > { %v903_v28 = vpop.xlane.xlu0 %902 }
 0x217   : > { %1828 = vrcp.f32 %v903_v28 }
 0x21a   : > { %v906_v29 = vpop.xlane.xlu1 %905 }
 0x21b   : > { %1830 = vrcp.f32 %v906_v29  ;;  %v909_v30 = vpop.xlane.xlu0 %908 }
 0x21c   : > { %1832 = vrcp.f32 %v909_v30 }
 0x21e   : > { %v912_v31 = vpop.xlane.xlu1 %911 }
 0x21f   : > { %1834 = vrcp.f32 %v912_v31  ;;  %v915_v32 = vpop.xlane.xlu0 %914 }
 0x220   : > { %1836 = vrcp.f32 %v915_v32 }
 0x221   : > { %v1829_v33 = vpop.eup %1828 }
 0x222   : > { %v926_v34 = vmul.f32 %v1829_v33, %v1813_v5  ;;  %v918_v35 = vpop.xlane.xlu1 %917 }
 0x223   : > { %1838 = vrcp.f32 %v918_v35  ;;  %v921_v37 = vpop.xlane.xlu0 %920 }
 0x224   : > { %1840 = vrcp.f32 %v921_v37  ;;  %1765 = vmatmul.mubr.msk.f32.vlgmr.msra.gmra.mrb[8].mxu0 %vm941_vm4, %v926_v34 }
 0x225   : > { %v1831_v38 = vpop.eup %1830  ;;  %1773 = vmatpush3.msk.msra.mxu0 %vm945_vm3, %v229_v36  ;;  %1774 = vmatprep.mubr.msk.f32.mxu0 %vm1853_vm0, %v1852_v0 }
 0x226   : > { %v1833_v39 = vpop.eup %1832  ;;  %v928_v40 = vmul.f32 %v1831_v38, %v1815_v11  ;;  %v924_v41 = vpop.xlane.xlu1 %923  ;;  %1782 = vmatprep.subr.mxu0 %v1852_v0 }
 0x227   : > { %v930_v43 = vmul.f32 %v1833_v39, %v1817_v13  ;;  %1842 = vrcp.f32 %v924_v41 }
 0x228   : > { %1770 = vmatmul.mubr.msk.f32.vlgmr.msra.gmra.mrb[8].mxu1 %vm941_vm4, %v928_v40 }
 0x229   : > { %v1835_v45 = vpop.eup %1834  ;;  %1775 = vmatmul.mubr.msk.f32.vlgmr.msra.gmra.mrb[10].mxu0 %vm941_vm4, %v930_v43  ;;  %1778 = vmatpush3.msk.msra.mxu1 %vm945_vm3, %v230_v42 }
 0x22a   : > { %v1837_v46 = vpop.eup %1836  ;;  %v932_v47 = vmul.f32 %v1835_v45, %v1819_v16  ;;  %1779 = vmatprep.mubr.msk.f32.mxu1 %vm1853_vm0, %v1852_v0  ;;  %1783 = vmatpush3.msk.msra.mxu0 %vm945_vm3, %v231_v44 }
 0x22b   : > { %v934_v49 = vmul.f32 %v1837_v46, %v1821_v17  ;;  %1784 = vmatprep.mubr.msk.f32.mxu0 %vm1853_vm0, %v1852_v0  ;;  %1787 = vmatprep.subr.mxu1 %v1852_v0 }
 0x22c   : > { %1780 = vmatmul.mubr.msk.f32.vlgmr.msra.gmra.mrb[10].mxu1 %vm941_vm4, %v932_v47  ;;  %1792 = vmatprep.subr.mxu0 %v1852_v0 }
 0x22d   : > { %v1839_v51 = vpop.eup %1838  ;;  %1785 = vmatmul.mubr.msk.f32.vlgmr.msra.gmra.mrb[12].mxu0 %vm941_vm4, %v934_v49  ;;  %1788 = vmatpush3.msk.msra.mxu1 %vm945_vm3, %v232_v48 }
 0x22e   : > { %v1841_v52 = vpop.eup %1840  ;;  %v936_v53 = vmul.f32 %v1839_v51, %v1971_v20  ;;  %1789 = vmatprep.mubr.msk.f32.mxu1 %vm1853_vm0, %v1852_v0  ;;  %1793 = vmatpush3.msk.msra.mxu0 %vm945_vm3, %v233_v50 }
 0x22f   : > { %v938_v55 = vmul.f32 %v1841_v52, %v1973_v21  ;;  %1794 = vmatprep.mubr.msk.f32.mxu0 %vm1853_vm0, %v1852_v0  ;;  %1797 = vmatprep.subr.mxu1 %v1852_v0 }
 0x230   : > { %1790 = vmatmul.mubr.msk.f32.vlgmr.msra.gmra.mrb[12].mxu1 %vm941_vm4, %v936_v53 }
 0x231   : > { %v1843_v56 = vpop.eup %1842  ;;  %1795 = vmatmul.mubr.msk.f32.vlgmr.msra.gmra.mrb[14].mxu0 %vm941_vm4, %v938_v55  ;;  %1798 = vmatpush3.msk.msra.mxu1 %vm945_vm3, %v234_v54 }
 0x232   : > { %v940_v57 = vmul.f32 %v1843_v56, %v1979_v24  ;;  %1799 = vmatprep.mubr.msk.f32.mxu1 %vm1853_vm0, %v1852_v0 }
 0x234   : > { %1800 = vmatmul.mubr.msk.f32.vlgmr.msra.gmra.mrb[14].mxu1 %vm941_vm4, %v940_v57 }
 0x2f7   : > { %v1015_v58 = vpop.f32.mrb[8].mxu0 }
 0x2f8   : > { %1552 = vst.msk [vmem:[%s210_s26] sm:$0xf] %vm1551_vm5, %v1015_v58  ;;  %v1766_v59 = vpop.f32.mrb[9].mxu0 }
 0x2fb   : > { %v1091_v60 = vpop.f32.mrb[8].mxu1 }
 0x2fc   : > { %1553 = vst.msk [vmem:[%s210_s26 + $0x4] sm:$0xf] %vm1551_vm5, %v1091_v60  ;;  %v1167_v61 = vpop.f32.mrb[10].mxu0  ;;  %v1771_v62 = vpop.f32.mrb[9].mxu1 }
 0x2fd   : > { %1554 = vst.msk [vmem:[%s210_s26 + $0x8] sm:$0xf] %vm1551_vm5, %v1167_v61  ;;  %v1776_v63 = vpop.f32.mrb[11].mxu0 }
 0x2ff   : > { %v1243_v0 = vpop.f32.mrb[10].mxu1 }
 0x300   : > { %1555 = vst.msk [vmem:[%s210_s26 + $0xc] sm:$0xf] %vm1551_vm5, %v1243_v0  ;;  %v1319_v1 = vpop.f32.mrb[12].mxu0  ;;  %v1781_v2 = vpop.f32.mrb[11].mxu1 }
 0x301   : > { %1556 = vst.msk [vmem:[%s210_s26 + $0x10] sm:$0xf] %vm1551_vm5, %v1319_v1  ;;  %v1786_v3 = vpop.f32.mrb[13].mxu0 }
 0x303   : > { %v1395_v4 = vpop.f32.mrb[12].mxu1 }
 0x304   : > { %1557 = vst.msk [vmem:[%s210_s26 + $0x14] sm:$0xf] %vm1551_vm5, %v1395_v4  ;;  %v1471_v5 = vpop.f32.mrb[14].mxu0  ;;  %v1791_v6 = vpop.f32.mrb[13].mxu1 }
 0x305   : > { %1558 = vst.msk [vmem:[%s210_s26 + $0x18] sm:$0xf] %vm1551_vm5, %v1471_v5  ;;  %v1796_v7 = vpop.f32.mrb[15].mxu0 }
 0x307   : > { %v1547_v8 = vpop.f32.mrb[14].mxu1 }
 0x308   : > { %1559 = vst.msk [vmem:[%s210_s26 + $0x1c] sm:$0xf] %vm1551_vm5, %v1547_v8  ;;  %v1801_v9 = vpop.f32.mrb[15].mxu1 }
 0x309 PF: > { %s13_s12 = sadd.s32 1, %s1850_s12  }
 0x30a   : > { %p10_p4 = scmp.ge.s32.totalorder %s13_s12, 4  }
 0x30c   :  { %12 = sbr.rel (!%p10_p4) target bundleno = 1 (0x1), region = 68 }

</bundles_post_ra>
